<compile_context>
chip_gen: v5e
topology: v5e:2x2
jax: 0.10.0
libtpu: 0.0.40
codegen_flags: <defaults>
</compile_context>

<pallas_src>
import functools

import jax
import jax.numpy as jnp
import numpy as np
from jax import lax
from jax.experimental import pallas as pl
from jax.experimental.pallas import tpu as pltpu

LANE = 128  # TPU lane width; Cout padding target


def _round_up(x, m):
    return (x + m - 1) // m * m


# ----------------------------------------------------------------------------
# Pallas kernel.
# Grid = (N, Cout_p // cout_tile)   (n outer / "parallel", j inner / "parallel")
#   xflat_ref : (M, Cin)          bf16  zero-padded image, rows flattened
#                                       row-major over (H+2, W+2); M=(H+2)(W+2)
#   w_ref     : (9, Cin, Cout_p)  bf16  reparam 3x3 weights (tap = dy*3+dx),
#                                       VMEM-resident (constant index_map)
#   b_ref     : (1, Cout_p)       f32   reparam bias, VMEM-resident
#   o_ref     : (L, cout_tile)    f32   flat output slab, L = M - 2*(W+3);
#                                       slab row k <-> flat padded pixel S+k
# ----------------------------------------------------------------------------
def repvgg_kernel(xflat_ref, w_ref, b_ref, o_ref, *, padded_w):
    L, cout_tile = o_ref.shape
    Wp = padded_w                 # W + 2
    S = Wp + 1                    # flat index of padded pixel (1, 1)

    co0 = pl.multiple_of(pl.program_id(1) * cout_tile, cout_tile)

    acc = jnp.zeros((L, cout_tile), jnp.float32)
    # Statically unrolled 9-tap loop: every tap is a contiguous, static slice
    # of the flat padded image (no reshape, no im2col staging stores).
    for t in range(9):
        dy, dx = divmod(t, 3)
        off = (dy - 1) * Wp + (dx - 1)                      # in [-(Wp+1), Wp+1]
        win = xflat_ref[S + off:S + off + L, :]             # (L, Cin)   bf16
        w_t = w_ref[t, :, pl.ds(co0, cout_tile)]            # (Cin, ct)  bf16
        acc = acc + jnp.dot(win, w_t, preferred_element_type=jnp.float32)
    acc = acc + b_ref[:, pl.ds(co0, cout_tile)]             # (1, ct) f32 bias
    o_ref[...] = jnp.maximum(acc, 0.0).astype(o_ref.dtype)


# ----------------------------------------------------------------------------
# Parameter setup (deterministic) + BN folding (plain-JAX glue)
# ----------------------------------------------------------------------------
def make_params(key, in_channels, out_channels):
    ks = jax.random.split(key, 12)
    p = {}
    # conv weights in PyTorch layout (Cout, Cin, kh, kw)
    p["w3"] = 0.1 * jax.random.normal(ks[0], (out_channels, in_channels, 3, 3),
                                      jnp.float32)
    p["w1"] = 0.1 * jax.random.normal(ks[1], (out_channels, in_channels, 1, 1),
                                      jnp.float32)

    def bn(k0, k1, k2, k3, c):
        return dict(
            gamma=0.5 + jax.random.uniform(k0, (c,), jnp.float32),
            beta=0.1 * jax.random.normal(k1, (c,), jnp.float32),
            mean=0.1 * jax.random.normal(k2, (c,), jnp.float32),
            var=0.5 + jax.random.uniform(k3, (c,), jnp.float32),
            eps=1e-5,
        )

    p["bn3"] = bn(ks[2], ks[3], ks[4], ks[5], out_channels)
    p["bn1"] = bn(ks[6], ks[7], ks[8], ks[9], out_channels)
    p["bnid"] = bn(ks[10], ks[11], ks[2], ks[6], in_channels)
    return p


def fuse_conv_bn(w, bn):
    t = bn["gamma"] / jnp.sqrt(bn["var"] + bn["eps"])       # (Cout,)
    w_f = w * t.reshape(-1, 1, 1, 1)                        # (Cout,Cin,kh,kw)
    b_f = bn["beta"] - bn["mean"] * t                       # (Cout,)
    return w_f, b_f


def fuse_id_bn(bn):
    s = bn["gamma"] / jnp.sqrt(bn["var"] + bn["eps"])
    b = bn["beta"] - bn["mean"] * s
    return s, b


# ----------------------------------------------------------------------------
# Wrapper: NCHW in / NCHW out
# ----------------------------------------------------------------------------
def repvgg_block_pallas(x_nchw, params):
    x = jnp.transpose(x_nchw, (0, 2, 3, 1)).astype(jnp.float32)   # NHWC
    N, H, W, Cin = x.shape

    # --- inference-mode BN folding + exact branch re-parameterization -------
    w3_f, b3_f = fuse_conv_bn(params["w3"], params["bn3"])
    w1_f, b1_f = fuse_conv_bn(params["w1"], params["bn1"])
    Cout = w3_f.shape[0]
    w_eq = w3_f.at[:, :, 1, 1].add(w1_f[:, :, 0, 0])   # fold 1x1 into center
    b_eq = b3_f + b1_f
    if Cin == Cout:  # identity-BN branch exists only when in==out (stride=1)
        ids, idb = fuse_id_bn(params["bnid"])
        w_eq = w_eq.at[jnp.arange(Cout), jnp.arange(Cin), 1, 1].add(ids)
        b_eq = b_eq + idb

    # --- pack operands: only Cout is lane-padded; Cin stays dense -----------
    Cout_p = _round_up(Cout, LANE)
    # 256-wide Cout tiles fill the v6e/v7x 2x256x256 MXU; 128 otherwise
    # (and 128 is the right choice on v5e's 4x128x128 MXU).
    cout_tile = 256 if Cout_p % 256 == 0 else LANE

    w_pad = jnp.zeros((Cout_p, Cin, 3, 3), jnp.float32).at[:Cout].set(w_eq)
    # (Cout_p,Cin,3,3) -> (3,3,Cin,Cout_p) -> (9,Cin,Cout_p); tap = dy*3+dx.
    w_k = jnp.transpose(w_pad, (2, 3, 1, 0)).reshape(9, Cin, Cout_p)
    w_k = w_k.astype(jnp.bfloat16)
    b_k = jnp.zeros((1, Cout_p), jnp.float32).at[0, :Cout].set(b_eq)

    # --- +1 spatial halo, flattened row-major, bf16 --------------------------
    Hp, Wp = H + 2, W + 2
    M = Hp * Wp
    S = Wp + 1                      # flat index of padded pixel (1, 1)
    L = M - 2 * S                   # rows of the computed slab
    xflat = jnp.pad(x, ((0, 0), (1, 1), (1, 1), (0, 0)))
    xflat = xflat.reshape(N, M, Cin).astype(jnp.bfloat16)

    n_ctile = Cout_p // cout_tile

    # VMEM budget: double-buffered input/output blocks + resident weights,
    # generous headroom, kept under v7x's 64 MiB physical VMEM.
    in_blk = _round_up(M, 16) * _round_up(Cin, LANE) * 2
    w_blk = 9 * _round_up(Cin, 16) * _round_up(Cout_p, LANE) * 2
    b_blk = 8 * _round_up(Cout_p, LANE) * 4
    out_blk = _round_up(L, 8) * cout_tile * 4
    vmem_limit = int(min(60 * 2**20,
                         max(16 * 2**20,
                             4 * (in_blk + w_blk + b_blk + out_blk))))

    cost = pl.CostEstimate(
        flops=2 * N * L * 9 * Cin * Cout_p,
        transcendentals=0,
        bytes_accessed=(N * M * Cin * 2 + 9 * Cin * Cout_p * 2
                        + Cout_p * 4 + N * L * Cout_p * 4))

    kernel = functools.partial(repvgg_kernel, padded_w=Wp)

    out_slab = pl.pallas_call(
        kernel,
        out_shape=jax.ShapeDtypeStruct((N, L, Cout_p), jnp.float32),
        grid=(N, n_ctile),
        in_specs=[
            # per-image flat padded input: index depends only on n, so it is
            # fetched once per image and reused across all Cout tiles.
            pl.BlockSpec((None, M, Cin), lambda n, j: (n, 0, 0)),
            # reparam weights / bias: constant index_map -> one DMA total,
            # VMEM-resident across the whole grid (no per-image re-fetch).
            pl.BlockSpec((9, Cin, Cout_p), lambda n, j: (0, 0, 0)),
            pl.BlockSpec((1, Cout_p), lambda n, j: (0, 0)),
        ],
        out_specs=pl.BlockSpec((None, L, cout_tile), lambda n, j: (n, 0, j)),
        compiler_params=pltpu.CompilerParams(
            dimension_semantics=("parallel", "parallel"),
            vmem_limit_bytes=vmem_limit),
        cost_estimate=cost,
    )(xflat, w_k, b_k)

    # Wrapper-side crop (layout plumbing only): slab row k <-> flat index S+k.
    full = jnp.pad(out_slab, ((0, 0), (S, M - S - L), (0, 0)))
    full = full.reshape(N, Hp, Wp, Cout_p)
    out_nhwc = full[:, 1:H + 1, 1:W + 1, :Cout]
    return jnp.transpose(out_nhwc, (0, 3, 1, 2))   # back to NCHW


# ----------------------------------------------------------------------------
# Pure-JAX reference (three explicit branches, lax.conv) for correctness
# ----------------------------------------------------------------------------
def repvgg_block_ref(x_nchw, params):
    x = jnp.transpose(x_nchw, (0, 2, 3, 1)).astype(jnp.float32)   # NHWC
    Cin = x.shape[-1]
    w3_f, b3_f = fuse_conv_bn(params["w3"], params["bn3"])
    w1_f, b1_f = fuse_conv_bn(params["w1"], params["bn1"])
    Cout = w3_f.shape[0]

    dn = ("NHWC", "HWIO", "NHWC")
    y = lax.conv_general_dilated(x, jnp.transpose(w3_f, (2, 3, 1, 0)), (1, 1),
                                 ((1, 1), (1, 1)), dimension_numbers=dn) + b3_f
    y = y + lax.conv_general_dilated(x, jnp.transpose(w1_f, (2, 3, 1, 0)),
                                     (1, 1), ((0, 0), (0, 0)),
                                     dimension_numbers=dn) + b1_f
    if Cin == Cout:  # mirror the module: rbr_identity only when in==out
        ids, idb = fuse_id_bn(params["bnid"])
        y = y + x * ids + idb
    out = jnp.maximum(y, 0.0)
    return jnp.transpose(out, (0, 3, 1, 2))


if __name__ == "__main__":
    key = jax.random.PRNGKey(0)
    k_x, k_p = jax.random.split(key)

    N, C, H, W = 2, 4, 16, 16   # in_channels == out_channels, stride=1
    x = jax.random.normal(k_x, (N, C, H, W), jnp.float32)
    params = make_params(k_p, C, C)

    out = jax.block_until_ready(repvgg_block_pallas(x, params))
    ref = jax.block_until_ready(repvgg_block_ref(x, params))

    # bf16 MXU operands (f32 accumulation) vs. the f32 reference.
    np.testing.assert_allclose(np.asarray(out), np.asarray(ref),
                               rtol=5e-2, atol=5e-2)
    print("KERNEL_OK")
</pallas_src>

<mosaic_0001>
module attributes {stable_mosaic.version = 11 : i64} {
  func.func @repvgg_kernel(%arg0: i32, %arg1: i32, %arg2: memref<1x324x4xbf16, #tpu.memory_space<vmem>>, %arg3: memref<9x4x128xbf16, #tpu.memory_space<vmem>>, %arg4: memref<1x128xf32, #tpu.memory_space<vmem>>, %arg5: memref<1x286x128xf32, #tpu.memory_space<vmem>>) attributes {dimension_semantics = [#tpu.dimension_semantics<parallel>, #tpu.dimension_semantics<parallel>], iteration_bounds = array<i64: 2, 1>, scalar_prefetch = 0 : i64, scratch_operands = 0 : i64, tpu.core_type = #tpu.core_type<tc>, window_params = [{transform_indices = @transform_0, window_bounds = array<i64: 1, 324, 4>}, {pipeline_mode = #tpu.pipeline_mode<synchronous>, transform_indices = @transform_1, window_bounds = array<i64: 9, 4, 128>}, {pipeline_mode = #tpu.pipeline_mode<synchronous>, transform_indices = @transform_2, window_bounds = array<i64: 1, 128>}, {transform_indices = @transform_3, window_bounds = array<i64: 1, 286, 128>}]} {
    %c128_i32 = arith.constant 128 : i32
    %0 = arith.muli %arg1, %c128_i32 : i32
    %1 = tpu.assume_multiple %0, 128 : i32
    %cst = arith.constant 0.000000e+00 : f32
    %2 = vector.broadcast %cst : f32 to vector<286x128xf32>
    %c0 = arith.constant 0 : index
    %c0_0 = arith.constant 0 : index
    %c0_1 = arith.constant 0 : index
    %3 = vector.load %arg2[%c0, %c0_0, %c0_1] : memref<1x324x4xbf16, #tpu.memory_space<vmem>>, vector<1x286x4xbf16>
    %4 = vector.shape_cast %3 : vector<1x286x4xbf16> to vector<286x4xbf16>
    %c0_2 = arith.constant 0 : index
    %c0_3 = arith.constant 0 : index
    %5 = arith.index_cast %1 : i32 to index
    %6 = vector.load %arg3[%c0_2, %c0_3, %5] : memref<9x4x128xbf16, #tpu.memory_space<vmem>>, vector<1x4x128xbf16>
    %7 = vector.shape_cast %6 : vector<1x4x128xbf16> to vector<4x128xbf16>
    %cst_4 = arith.constant dense<0.000000e+00> : vector<286x128xf32>
    %8 = tpu.matmul %4, %7, %cst_4 {dimension_numbers = #tpu.dot_dimension_numbers<[1], [0], [0], [1], [0, 0, 1, 1], [], []>} : vector<286x4xbf16>, vector<4x128xbf16>, vector<286x128xf32> -> vector<286x128xf32>
    %9 = arith.addf %2, %8 : vector<286x128xf32>
    %c0_5 = arith.constant 0 : index
    %c1 = arith.constant 1 : index
    %c0_6 = arith.constant 0 : index
    %10 = vector.load %arg2[%c0_5, %c1, %c0_6] : memref<1x324x4xbf16, #tpu.memory_space<vmem>>, vector<1x286x4xbf16>
    %11 = vector.shape_cast %10 : vector<1x286x4xbf16> to vector<286x4xbf16>
    %c1_7 = arith.constant 1 : index
    %c0_8 = arith.constant 0 : index
    %12 = arith.index_cast %1 : i32 to index
    %13 = vector.load %arg3[%c1_7, %c0_8, %12] : memref<9x4x128xbf16, #tpu.memory_space<vmem>>, vector<1x4x128xbf16>
    %14 = vector.shape_cast %13 : vector<1x4x128xbf16> to vector<4x128xbf16>
    %cst_9 = arith.constant dense<0.000000e+00> : vector<286x128xf32>
    %15 = tpu.matmul %11, %14, %cst_9 {dimension_numbers = #tpu.dot_dimension_numbers<[1], [0], [0], [1], [0, 0, 1, 1], [], []>} : vector<286x4xbf16>, vector<4x128xbf16>, vector<286x128xf32> -> vector<286x128xf32>
    %16 = arith.addf %9, %15 : vector<286x128xf32>
    %c0_10 = arith.constant 0 : index
    %c2 = arith.constant 2 : index
    %c0_11 = arith.constant 0 : index
    %17 = vector.load %arg2[%c0_10, %c2, %c0_11] : memref<1x324x4xbf16, #tpu.memory_space<vmem>>, vector<1x286x4xbf16>
    %18 = vector.shape_cast %17 : vector<1x286x4xbf16> to vector<286x4xbf16>
    %c2_12 = arith.constant 2 : index
    %c0_13 = arith.constant 0 : index
    %19 = arith.index_cast %1 : i32 to index
    %20 = vector.load %arg3[%c2_12, %c0_13, %19] : memref<9x4x128xbf16, #tpu.memory_space<vmem>>, vector<1x4x128xbf16>
    %21 = vector.shape_cast %20 : vector<1x4x128xbf16> to vector<4x128xbf16>
    %cst_14 = arith.constant dense<0.000000e+00> : vector<286x128xf32>
    %22 = tpu.matmul %18, %21, %cst_14 {dimension_numbers = #tpu.dot_dimension_numbers<[1], [0], [0], [1], [0, 0, 1, 1], [], []>} : vector<286x4xbf16>, vector<4x128xbf16>, vector<286x128xf32> -> vector<286x128xf32>
    %23 = arith.addf %16, %22 : vector<286x128xf32>
    %c0_15 = arith.constant 0 : index
    %c18 = arith.constant 18 : index
    %c0_16 = arith.constant 0 : index
    %24 = vector.load %arg2[%c0_15, %c18, %c0_16] : memref<1x324x4xbf16, #tpu.memory_space<vmem>>, vector<1x286x4xbf16>
    %25 = vector.shape_cast %24 : vector<1x286x4xbf16> to vector<286x4xbf16>
    %c3 = arith.constant 3 : index
    %c0_17 = arith.constant 0 : index
    %26 = arith.index_cast %1 : i32 to index
    %27 = vector.load %arg3[%c3, %c0_17, %26] : memref<9x4x128xbf16, #tpu.memory_space<vmem>>, vector<1x4x128xbf16>
    %28 = vector.shape_cast %27 : vector<1x4x128xbf16> to vector<4x128xbf16>
    %cst_18 = arith.constant dense<0.000000e+00> : vector<286x128xf32>
    %29 = tpu.matmul %25, %28, %cst_18 {dimension_numbers = #tpu.dot_dimension_numbers<[1], [0], [0], [1], [0, 0, 1, 1], [], []>} : vector<286x4xbf16>, vector<4x128xbf16>, vector<286x128xf32> -> vector<286x128xf32>
    %30 = arith.addf %23, %29 : vector<286x128xf32>
    %c0_19 = arith.constant 0 : index
    %c19 = arith.constant 19 : index
    %c0_20 = arith.constant 0 : index
    %31 = vector.load %arg2[%c0_19, %c19, %c0_20] : memref<1x324x4xbf16, #tpu.memory_space<vmem>>, vector<1x286x4xbf16>
    %32 = vector.shape_cast %31 : vector<1x286x4xbf16> to vector<286x4xbf16>
    %c4 = arith.constant 4 : index
    %c0_21 = arith.constant 0 : index
    %33 = arith.index_cast %1 : i32 to index
    %34 = vector.load %arg3[%c4, %c0_21, %33] : memref<9x4x128xbf16, #tpu.memory_space<vmem>>, vector<1x4x128xbf16>
    %35 = vector.shape_cast %34 : vector<1x4x128xbf16> to vector<4x128xbf16>
    %cst_22 = arith.constant dense<0.000000e+00> : vector<286x128xf32>
    %36 = tpu.matmul %32, %35, %cst_22 {dimension_numbers = #tpu.dot_dimension_numbers<[1], [0], [0], [1], [0, 0, 1, 1], [], []>} : vector<286x4xbf16>, vector<4x128xbf16>, vector<286x128xf32> -> vector<286x128xf32>
    %37 = arith.addf %30, %36 : vector<286x128xf32>
    %c0_23 = arith.constant 0 : index
    %c20 = arith.constant 20 : index
    %c0_24 = arith.constant 0 : index
    %38 = vector.load %arg2[%c0_23, %c20, %c0_24] : memref<1x324x4xbf16, #tpu.memory_space<vmem>>, vector<1x286x4xbf16>
    %39 = vector.shape_cast %38 : vector<1x286x4xbf16> to vector<286x4xbf16>
    %c5 = arith.constant 5 : index
    %c0_25 = arith.constant 0 : index
    %40 = arith.index_cast %1 : i32 to index
    %41 = vector.load %arg3[%c5, %c0_25, %40] : memref<9x4x128xbf16, #tpu.memory_space<vmem>>, vector<1x4x128xbf16>
    %42 = vector.shape_cast %41 : vector<1x4x128xbf16> to vector<4x128xbf16>
    %cst_26 = arith.constant dense<0.000000e+00> : vector<286x128xf32>
    %43 = tpu.matmul %39, %42, %cst_26 {dimension_numbers = #tpu.dot_dimension_numbers<[1], [0], [0], [1], [0, 0, 1, 1], [], []>} : vector<286x4xbf16>, vector<4x128xbf16>, vector<286x128xf32> -> vector<286x128xf32>
    %44 = arith.addf %37, %43 : vector<286x128xf32>
    %c0_27 = arith.constant 0 : index
    %c36 = arith.constant 36 : index
    %c0_28 = arith.constant 0 : index
    %45 = vector.load %arg2[%c0_27, %c36, %c0_28] : memref<1x324x4xbf16, #tpu.memory_space<vmem>>, vector<1x286x4xbf16>
    %46 = vector.shape_cast %45 : vector<1x286x4xbf16> to vector<286x4xbf16>
    %c6 = arith.constant 6 : index
    %c0_29 = arith.constant 0 : index
    %47 = arith.index_cast %1 : i32 to index
    %48 = vector.load %arg3[%c6, %c0_29, %47] : memref<9x4x128xbf16, #tpu.memory_space<vmem>>, vector<1x4x128xbf16>
    %49 = vector.shape_cast %48 : vector<1x4x128xbf16> to vector<4x128xbf16>
    %cst_30 = arith.constant dense<0.000000e+00> : vector<286x128xf32>
    %50 = tpu.matmul %46, %49, %cst_30 {dimension_numbers = #tpu.dot_dimension_numbers<[1], [0], [0], [1], [0, 0, 1, 1], [], []>} : vector<286x4xbf16>, vector<4x128xbf16>, vector<286x128xf32> -> vector<286x128xf32>
    %51 = arith.addf %44, %50 : vector<286x128xf32>
    %c0_31 = arith.constant 0 : index
    %c37 = arith.constant 37 : index
    %c0_32 = arith.constant 0 : index
    %52 = vector.load %arg2[%c0_31, %c37, %c0_32] : memref<1x324x4xbf16, #tpu.memory_space<vmem>>, vector<1x286x4xbf16>
    %53 = vector.shape_cast %52 : vector<1x286x4xbf16> to vector<286x4xbf16>
    %c7 = arith.constant 7 : index
    %c0_33 = arith.constant 0 : index
    %54 = arith.index_cast %1 : i32 to index
    %55 = vector.load %arg3[%c7, %c0_33, %54] : memref<9x4x128xbf16, #tpu.memory_space<vmem>>, vector<1x4x128xbf16>
    %56 = vector.shape_cast %55 : vector<1x4x128xbf16> to vector<4x128xbf16>
    %cst_34 = arith.constant dense<0.000000e+00> : vector<286x128xf32>
    %57 = tpu.matmul %53, %56, %cst_34 {dimension_numbers = #tpu.dot_dimension_numbers<[1], [0], [0], [1], [0, 0, 1, 1], [], []>} : vector<286x4xbf16>, vector<4x128xbf16>, vector<286x128xf32> -> vector<286x128xf32>
    %58 = arith.addf %51, %57 : vector<286x128xf32>
    %c0_35 = arith.constant 0 : index
    %c38 = arith.constant 38 : index
    %c0_36 = arith.constant 0 : index
    %59 = vector.load %arg2[%c0_35, %c38, %c0_36] : memref<1x324x4xbf16, #tpu.memory_space<vmem>>, vector<1x286x4xbf16>
    %60 = vector.shape_cast %59 : vector<1x286x4xbf16> to vector<286x4xbf16>
    %c8 = arith.constant 8 : index
    %c0_37 = arith.constant 0 : index
    %61 = arith.index_cast %1 : i32 to index
    %62 = vector.load %arg3[%c8, %c0_37, %61] : memref<9x4x128xbf16, #tpu.memory_space<vmem>>, vector<1x4x128xbf16>
    %63 = vector.shape_cast %62 : vector<1x4x128xbf16> to vector<4x128xbf16>
    %cst_38 = arith.constant dense<0.000000e+00> : vector<286x128xf32>
    %64 = tpu.matmul %60, %63, %cst_38 {dimension_numbers = #tpu.dot_dimension_numbers<[1], [0], [0], [1], [0, 0, 1, 1], [], []>} : vector<286x4xbf16>, vector<4x128xbf16>, vector<286x128xf32> -> vector<286x128xf32>
    %65 = arith.addf %58, %64 : vector<286x128xf32>
    %c0_39 = arith.constant 0 : index
    %66 = arith.index_cast %1 : i32 to index
    %67 = vector.load %arg4[%c0_39, %66] : memref<1x128xf32, #tpu.memory_space<vmem>>, vector<1x128xf32>
    %68 = vector.broadcast %67 : vector<1x128xf32> to vector<286x128xf32>
    %69 = arith.addf %65, %68 : vector<286x128xf32>
    %cst_40 = arith.constant 0.000000e+00 : f32
    %70 = vector.broadcast %cst_40 : f32 to vector<286x128xf32>
    %71 = arith.maximumf %69, %70 : vector<286x128xf32>
    %c0_41 = arith.constant 0 : index
    %c0_42 = arith.constant 0 : index
    %c0_43 = arith.constant 0 : index
    %72 = vector.load %arg5[%c0_41, %c0_42, %c0_43] : memref<1x286x128xf32, #tpu.memory_space<vmem>>, vector<1x286x128xf32>
    %73 = vector.shape_cast %72 : vector<1x286x128xf32> to vector<286x128xf32>
    %74 = vector.shape_cast %71 : vector<286x128xf32> to vector<1x286x128xf32>
    tpu.vector_store %arg5[%c0_41, %c0_42, %c0_43], %74 {strides = array<i32>} : memref<1x286x128xf32, #tpu.memory_space<vmem>>, vector<1x286x128xf32>,
    return
  }
  func.func @transform_0(%arg0: i32, %arg1: i32) -> (i32, i32, i32) {
    %c0_i32 = arith.constant 0 : i32
    %c0_i32_0 = arith.constant 0 : i32
    %c0_i32_1 = arith.constant 0 : i32
    return %arg0, %c0_i32, %c0_i32_0 : i32, i32, i32
  }
  func.func @transform_1(%arg0: i32, %arg1: i32) -> (i32, i32, i32) {
    %c0_i32 = arith.constant 0 : i32
    %c0_i32_0 = arith.constant 0 : i32
    %c0_i32_1 = arith.constant 0 : i32
    %c0_i32_2 = arith.constant 0 : i32
    return %c0_i32, %c0_i32_0, %c0_i32_1 : i32, i32, i32
  }
  func.func @transform_2(%arg0: i32, %arg1: i32) -> (i32, i32) {
    %c0_i32 = arith.constant 0 : i32
    %c0_i32_0 = arith.constant 0 : i32
    %c0_i32_1 = arith.constant 0 : i32
    return %c0_i32, %c0_i32_0 : i32, i32
  }
  func.func @transform_3(%arg0: i32, %arg1: i32) -> (i32, i32, i32) {
    %c0_i32 = arith.constant 0 : i32
    %c0_i32_0 = arith.constant 0 : i32
    return %arg0, %c0_i32, %arg1 : i32, i32, i32
  }
}

</mosaic_0001>

<bundles_post_ra>
// kernel: tpu_custom_call.1
= control target key start
LH: loop header
LB: loop body
LE: loop exit
PB: predicated region body
PF: predicated region fallthrough
CT: control target
= control target key end

     0   :  { %s3917_s12 = smov 0   ;;  %s3919_s13 = smov 0   ;;  %s5003_s0 = inlined_call_operand.vmem [shape: bf16[2,324,4], index: 0, kind: input, shape index: {}]   ;;  %s5004_s1 = inlined_call_operand.vmem [shape: bf16[9,4,128], index: 1, kind: input, shape index: {}]   ;;  %s5005_s2 = inlined_call_operand.vmem [shape: f32[1,128], index: 2, kind: input, shape index: {}]   ;;  %s5006_s3 = inlined_call_operand.vmem [shape: f32[2,286,128], index: 3, kind: output, shape index: {}]  }
   0x1   :  { %s3921_s14 = smov 0  }
   0x2 LB: > { %s25_s15 = sadd.s32 1, %s3891_s13  ;;  %p3290_p0 = scmp.ge.s32.totalorder %s3895_s14, 1  ;;  %s3895_s14 = sphi %s3921_s14, %s13_s14   ;;  %s3891_s13 = sphi %s3919_s13, %s5028_s13   ;;  %s3887_s12 = sphi %s3917_s12, %s5027_s12  }
   0x3   : > { %p27_p1 = scmp.ge.s32.totalorder %s25_s15, 2  ;;  %p151_p2 = scmp.lt.s32.totalorder %s3895_s14, 3 }
   0x5   : > { %s5030_s15 = smov (%p27_p1, %s25_s15), 0  ;;  %p152_p3 = pnand %p3290_p0, %p151_p2 }
   0x7   : > { %155 = sbr.rel (%p152_p3) target bundleno = 818 (0x332), region = 32 }
   0xc   : > { %v3293_v0 = vld [vmem:[%s5004_s1 + $0x2] sm:$0x3]  ;;  %vm528_vm0 = vcmask 1041408   ;;  %p178_p4 = scmp.lt.s32.totalorder %s3887_s12, 1  ;;  %v3394_v2 = vld [vmem:[%s5004_s1 + $0x4] sm:$0x3] }
   0xd   : > { %v530_v1 = vsel %vm528_vm0, %v3293_v0, 0  ;;  %v233_v3 = vld [vmem:[%s5004_s1] sm:$0x3]  ;;  %v872_v4 = vsel %vm528_vm0, %v3394_v2, 0  ;;  %v3504_v6 = vld [vmem:[%s5004_s1 + $0x8] sm:$0x3] }
   0xe   : > { %3822 = vmatpush.bf16.msra.mxu1 %v530_v1  ;;  %3823 = vmatpush.bf16.msra.mxu2 %v530_v1  ;;  %s5032_s12 = smov (!%p178_p4, %s3887_s12), 1  ;;  %v672_v5 = vsel %vm528_vm0, %v233_v3, 0  ;;  %v1722_v7 = vsel %vm528_vm0, %v3504_v6, 0  ;;  %vm329_vm1 = vsmask.f32 7424  ;;  %vm473_vm2 = vcmask 31744  }
   0xf   : > { %539 = vmatpush.bf16.msra.mxu0 %v530_v1  ;;  %s3825_s24 = smul.u32 164, %s5032_s12  ;;  %3824 = vmatpush.bf16.msra.mxu3 %v530_v1  ;;  %v3413_v45 = vld [vmem:[%s5004_s1 + $0x6] sm:$0x3]  ;;  %vm781_vm3 = vcmask 1046528   ;;  %vm1500_vm4 = vsmask.f32 6400 }
  0x10   : > { %v1229_v53 = vsel %vm528_vm0, %v3413_v45, 0  ;;  %vm2468_vm5 = vsmask.f32 5376  ;;  %vm1867_vm6 = vcmask 1045504   ;;  %vm2839_vm7 = vcmask 1044480   ;;  %s3826_s17 = smul.u32 288, %s5032_s12 }
  0x11   : > { %s3957_s27 = scalar_lea.vmem %s5003_s0, %s3825_s24 }
  0x12   : > { %881 = vmatpush.bf16.msrb.mxu2 %v872_v4  ;;  %681 = vmatpush.bf16.msrb.mxu1 %v672_v5  ;;  %v3960_v8 = vld [vmem:[%s3957_s27 + $0x28] sm:$0xff]  ;;  %v3963_v9 = vld [vmem:[%s3957_s27 + $0x30] sm:$0xff]  ;;  %v3969_v11 = vld [vmem:[%s3957_s27 + $0x58] sm:$0xff]  ;;  %s4725_s12 = scalar_lea.vmem %s5006_s3, %s3826_s17 }
  0x13   : > { %1731 = vmatpush.bf16.msrb.mxu0 %v1722_v7  ;;  %v3966_v10 = vld [vmem:[%s3957_s27 + $0x50] sm:$0xff]  ;;  %v3972_v12 = vld [vmem:[%s3957_s27] sm:$0xff]   ;;  %v3975_v13 = vld [vmem:[%s3957_s27 + $0x8] sm:$0xff]  ;;  %v370_v14 = vshll.u32 %v3960_v8, 16  ;;  %v374_v15 = vshrl.u32 %v3960_v8, 16  ;;  %v378_v16 = vshll.u32 %v3963_v9, 16  ;;  %1238 = vmatpush.bf16.msrb.mxu3 %v1229_v53 }
  0x14   : > { %v410_v17 = vshll.u32 %v3966_v10, 16  ;;  %v414_v18 = vshrl.u32 %v3966_v10, 16  ;;  %v418_v19 = vshll.u32 %v3969_v11, 16  ;;  %v331_v20 = vshrl.u32 %v3972_v12, 16  ;;  %v3993_v31 = vld [vmem:[%s3957_s27 + $0x78] sm:$0xff]  ;;  %v3752_v32 = vld [vmem:[%s3957_s27 + $0x80] sm:$0xff] }
  0x15   : > { %v333_v21 = vshll.u32 %v3972_v12, 16  ;;  %v3985_v22 = vrot.slane %v370_v14, 1  ;;  %v380_v23 = vrot.slane %v378_v16, 1  ;;  %v338_v25 = vshll.u32 %v3975_v13, 16  ;;  %v4002_v37 = vld [vmem:[%s3957_s27 + $0x38] sm:$0xff]  ;;  %v4006_v38 = vld [vmem:[%s3957_s27 + $0x60] sm:$0xff] }
  0x16   : > { %v3987_v24 = vrot.slane %v410_v17, 1  ;;  %v420_v26 = vrot.slane %v418_v19, 1  ;;  %v450_v39 = vshll.u32 %v3993_v31, 16  ;;  %v454_v40 = vshrl.u32 %v3993_v31, 16  ;;  %v4011_v42 = vld [vmem:[%s3957_s27 + $0x10] sm:$0xff]  ;;  %v4029_v59 = vld [vmem:[%s3957_s27 + $0x48] sm:$0xff] }
  0x17   : > { %v335_v27 = vrot.slane %v333_v21, 1  ;;  %v376_v28 = vor.u32 %v374_v15, %v3985_v22  ;;  %v340_v30 = vrot.slane %v338_v25, 1  ;;  %v458_v41 = vshll.u32 %v3752_v32, 16  ;;  %v3813_v62 = vld [vmem:[%s3957_s27 + $0x88] sm:$0xff]   ;;  %v4039_v5 = vld [vmem:[%s3957_s27 + $0x40] sm:$0xff]  ;;  %v4047_v17 = vld [vmem:[%s3957_s27 + $0x18] sm:$0xff] }
  0x18   : > { %v416_v29 = vor.u32 %v414_v18, %v3987_v24  ;;  %v4013_v43 = vrot.slane %v450_v39, 1  ;;  %v382_v46 = vshrl.u32 %v3963_v9, 16  ;;  %v386_v47 = vshll.u32 %v4002_v37, 16  ;;  %v4043_v6 = vld [vmem:[%s3957_s27 + $0x68] sm:$0xff] }
  0x19   : > { %v336_v33 = vor.u32 %v335_v27, %v331_v20  ;;  %v381_v34 = vsel %vm329_vm1, %v376_v28, %v380_v23  ;;  %v460_v44 = vrot.slane %v458_v41, 1  ;;  %v422_v48 = vshrl.u32 %v3969_v11, 16 }
  0x1a   : > { %v421_v35 = vsel %vm329_vm1, %v416_v29, %v420_v26  ;;  %3363 = vmatmul.msk.bf16.vlgmr.msra.gmra.mxu1 %vm473_vm2, %v381_v34  ;;  %v426_v49 = vshll.u32 %v4006_v38, 16  ;;  %v456_v50 = vor.u32 %v454_v40, %v4013_v43  ;;  %v342_v51 = vshrl.u32 %v3975_v13, 16 }
  0x1b   : > { %3368 = vmatmul.msk.bf16.vlgmr.msra.gmra.mxu2 %vm473_vm2, %v421_v35  ;;  %v341_v36 = vsel %vm329_vm1, %v336_v33, %v340_v30  ;;  %v346_v52 = vshll.u32 %v4011_v42, 16  ;;  %v384_v55 = vor.u32 %v382_v46, %v380_v23  ;;  %v388_v56 = vrot.slane %v386_v47, 1 }
  0x1c   : > { %3358 = vmatmul.msk.bf16.vlgmr.msra.gmra.mxu0 %vm473_vm2, %v341_v36  ;;  %v461_v54 = vsel %vm329_vm1, %v456_v50, %v460_v44  ;;  %v424_v57 = vor.u32 %v422_v48, %v420_v26  ;;  %v428_v58 = vrot.slane %v426_v49, 1  ;;  %v344_v60 = vor.u32 %v342_v51, %v340_v30  ;;  %v4055_v26 = vld [vmem:[%s3957_s27 + $0x20] sm:$0xff]  ;;  %v4073_v48 = vld [vmem:[%s3957_s27 + $0x70] sm:$0xff] }
  0x1d   : > { %3373 = vmatmul.msk.bf16.vlgmr.msra.gmra.mxu3 %vm473_vm2, %v461_v54  ;;  %v348_v61 = vrot.slane %v346_v52, 1  ;;  %v389_v63 = vsel %vm329_vm1, %v384_v55, %v388_v56  ;;  %v462_v1 = vshrl.u32 %v3752_v32, 16  ;;  %v466_v2 = vshll.u32 %v3813_v62, 16 }
  0x1e   : > { %v429_v0 = vsel %vm329_vm1, %v424_v57, %v428_v58  ;;  %v402_v3 = vshll.u32 %v4029_v59, 16  ;;  %v406_v16 = vshrl.u32 %v4029_v59, 16  ;;  %v390_v19 = vshrl.u32 %v4002_v37, 16 }
  0x1f   : > { %v349_v4 = vsel %vm329_vm1, %v344_v60, %v348_v61  ;;  %v464_v7 = vor.u32 %v462_v1, %v460_v44  ;;  %v468_v14 = vrot.slane %v466_v2, 1  ;;  %v394_v20 = vshll.u32 %v4039_v5, 16  ;;  %v3416_v60 = vld [vmem:[%s3957_s27 + $0x8] sm:$0xe] }
  0x20   : > { %v404_v15 = vrot.slane %v402_v3, 1  ;;  %v430_v21 = vshrl.u32 %v4006_v38, 16  ;;  %v434_v23 = vshll.u32 %v4043_v6, 16  ;;  %v350_v28 = vshrl.u32 %v4011_v42, 16  ;;  %v3610_v3 = vld [vmem:[%s5004_s1 + $0xc] sm:$0x3] }
  0x21   : > { %v469_v25 = vsel %vm329_vm1, %v464_v7, %v468_v14  ;;  %v354_v29 = vshll.u32 %v4047_v17, 16  ;;  %v392_v30 = vor.u32 %v390_v19, %v388_v56  ;;  %v396_v32 = vrot.slane %v394_v20, 1  ;;  %v3716_v19 = vld [vmem:[%s5004_s1 + $0x10] sm:$0x3] }
  0x22   : > { %v408_v18 = vor.u32 %v406_v16, %v404_v15  ;;  %v432_v33 = vor.u32 %v430_v21, %v428_v58  ;;  %v436_v34 = vrot.slane %v434_v23, 1  ;;  %v362_v35 = vshll.u32 %v4055_v26, 16 }
  0x23   : > { %v352_v36 = vor.u32 %v350_v28, %v348_v61  ;;  %v356_v39 = vrot.slane %v354_v29, 1  ;;  %v397_v40 = vsel %vm329_vm1, %v392_v30, %v396_v32  ;;  %v366_v44 = vshrl.u32 %v4055_v26, 16  ;;  %v3753_v61 = vld [vmem:[%s3957_s27 + $0x8] sm:$0xf0] }
  0x24   : > { %v4059_v27 = vsel %vm329_vm1, %v408_v18, %v3987_v24  ;;  %v437_v24 = vsel %vm329_vm1, %v432_v33, %v436_v34  ;;  %v364_v41 = vrot.slane %v362_v35, 1  ;;  %v470_v47 = vshrl.u32 %v3813_v62, 16  ;;  %v3754_v62 = vld [vmem:[%s3957_s27 + $0x10] sm:$0xff]  ;;  %v4111_v28 = vld [vmem:[%s3957_s27 + $0xc] sm:$0xf] }
  0x25   : > { %v357_v45 = vsel %vm329_vm1, %v352_v36, %v356_v39  ;;  %v398_v51 = vshrl.u32 %v4039_v5, 16  ;;  %v438_v52 = vshrl.u32 %v4043_v6, 16  ;;  %v442_v53 = vshll.u32 %v4073_v48, 16  ;;  %v3771_v35 = vld [vmem:[%s3957_s27 + $0x10] sm:$0xff] }
  0x26   : > { %v368_v46 = vor.u32 %v366_v44, %v364_v41  ;;  %v472_v50 = vor.u32 %v470_v47, %v468_v14  ;;  %v358_v54 = vshrl.u32 %v4047_v17, 16  ;;  %v1140_v2 = vrot.slane %v3754_v62, 1  ;;  %v3697_v14 = vld [vmem:[%s5004_s1 + $0xe] sm:$0x3] }
  0x27   : > { %v400_v55 = vor.u32 %v398_v51, %v396_v32  ;;  %v440_v56 = vor.u32 %v438_v52, %v436_v34  ;;  %v444_v57 = vrot.slane %v442_v53, 1  ;;  %v2323_v7 = vsel %vm528_vm0, %v3610_v3, 0  ;;  %v3755_v34 = vld [vmem:[%s3957_s27 + $0x18] sm:$0xff] }
  0x28   : > { %v373_v49 = vsel %vm329_vm1, %v368_v46, %v3985_v22  ;;  %v360_v58 = vor.u32 %v358_v54, %v356_v39  ;;  %2332 = vmatpush.bf16.msra.mxu2 %v2323_v7  ;;  %v2694_v16 = vsel %vm528_vm0, %v3697_v14, 0  ;;  %v2932_v20 = vsel %vm528_vm0, %v3716_v19, 0  ;;  %v3818_v39 = vld [vmem:[%s3957_s27] sm:$0xf0]  ;;  %v3757_v7 = vld [vmem:[%s3957_s27 + $0x28] sm:$0xff] }
  0x29   : > { %v405_v22 = vsel %vm329_vm1, %v400_v55, %v404_v15  ;;  %v3591_v15 = vld [vmem:[%s5004_s1 + $0xa] sm:$0x3]  ;;  %2703 = vmatpush.bf16.msra.mxu3 %v2694_v16  ;;  %2941 = vmatpush.bf16.msra.mxu0 %v2932_v20  ;;  %v446_v21 = vshrl.u32 %v4073_v48, 16  ;;  %v5007_v32 = vunpack.c.l.b16 %v4111_v28  ;;  %v3773_v14 = vld [vmem:[%s3957_s27 + $0x20] sm:$0xff] }
  0x2a   : > { %3364 = vmatmul.msk.bf16.gmra.mxu1 %vm473_vm2, %v389_v63  ;;  %v445_v63 = vsel %vm329_vm1, %v440_v56, %v444_v57  ;;  %v365_v1 = vsel %vm329_vm1, %v360_v58, %v364_v41  ;;  %v1960_v18 = vsel %vm528_vm0, %v3591_v15, 0  ;;  %v1146_v15 = vrot.slane %v3757_v7, 1 }
  0x2b   : > { %3369 = vmatmul.msk.bf16.gmra.mxu2 %vm473_vm2, %v429_v0  ;;  %v3417_v0 = vor.u32 %v3753_v61, %v3416_v60  ;;  %1969 = vmatpush.bf16.msra.mxu1 %v1960_v18  ;;  %v448_v29 = vor.u32 %v446_v21, %v444_v57  ;;  %v3756_v57 = vld [vmem:[%s3957_s27 + $0x20] sm:$0xff]  ;;  %v3772_v60 = vld [vmem:[%s3957_s27 + $0x18] sm:$0xff]  ;;  %v1528_v16 = vshrl.u32 %v3773_v14, 16  ;;  %v1531_v18 = vshll.u32 %v3773_v14, 16 }
  0x2c   : > { %3359 = vmatmul.msk.bf16.gmra.mxu0 %vm473_vm2, %v349_v4  ;;  %v1144_v61 = vrot.slane %v3756_v57, 1  ;;  %v1519_v62 = vshrl.u32 %v3772_v60, 16 }
  0x2d   : > { %3374 = vmatmul.msk.bf16.gmra.mxu3 %vm473_vm2, %v469_v25  ;;  %v1139_v4 = vrot.slane %v3417_v0, 1  ;;  %v1366_v25 = vld [vmem:[%s3957_s27 + $0x8] sm:$0xe]  ;;  %v453_v33 = vsel %vm329_vm1, %v448_v29, %v4013_v43  ;;  %v1513_v43 = vshll.u32 %v3771_v35, 16  ;;  %v1530_v20 = vrot.slane %v1528_v16, 1 }
  0x2e   : > { %v1444_v30 = vunpack.c.l.b16 %v1366_v25  ;;  %v1521_v0 = vrot.slane %v1519_v62, 1  ;;  %v1147_v19 = vsel %vm781_vm3, %v1144_v61, %v1146_v15  ;;  %v1533_v21 = vrot.slane %v1531_v18, 2 }
  0x2f   : > { %v1141_v23 = vsel %vm781_vm3, %v1139_v4, %v1140_v2 }
  0x30   : > { %v1481_v36 = vpack.c.b16 %v5007_v32, %v1444_v30  ;;  %v1534_v25 = vor.u32 %v1533_v21, %v1530_v20  ;;  %v3758_v30 = vld [vmem:[%s3957_s27 + $0x30] sm:$0xff]  ;;  %v793_v20 = vrot.slane %v3963_v9, 1 }
  0x32   : > { %v1502_v41 = vshrl.u32 %v1481_v36, 16  ;;  %v1505_v44 = vshll.u32 %v1481_v36, 16 }
  0x34   : > { %v1507_v51 = vrot.slane %v1505_v44, 2 }
  0x3a   : > { %3365 = vmatmul.msk.bf16.gmra.mxu1 %vm473_vm2, %v397_v40  ;;  %v1142_v40 = vrot.slane %v3755_v34, 1  ;;  %v1148_v34 = vrot.slane %v3758_v30, 1 }
  0x3b   : > { %3370 = vmatmul.msk.bf16.gmra.mxu2 %vm473_vm2, %v437_v24  ;;  %v3819_v24 = vld [vmem:[%s3957_s27] sm:$0xe] }
  0x3c   : > { %3360 = vmatmul.msk.bf16.gmra.mxu0 %vm473_vm2, %v357_v45  ;;  %v1510_v45 = vshrl.u32 %v3771_v35, 16  ;;  %v3820_v46 = vor.u32 %v3819_v24, %v3818_v39  ;;  %v1143_v47 = vsel %vm781_vm3, %v1140_v2, %v1142_v40  ;;  %v785_v2 = vrot.slane %v4011_v42, 1 }
  0x3d   : > { %3375 = vmatmul.msk.bf16.gmra.mxu3 %vm473_vm2, %v472_v50  ;;  %v1504_v50 = vrot.slane %v1502_v41, 1  ;;  %v1149_v39 = vsel %vm781_vm3, %v1146_v15, %v1148_v34  ;;  %v789_v41 = vrot.slane %v4055_v26, 1 }
  0x3e   : > { %v1512_v52 = vrot.slane %v1510_v45, 1  ;;  %v782_v53 = vrot.slane %v3820_v46, 1 }
  0x3f   : > { %v1508_v54 = vor.u32 %v1507_v51, %v1504_v50  ;;  %v3775_v50 = vld [vmem:[%s3957_s27 + $0x30] sm:$0xff] }
  0x4a   : > { %3366 = vmatmul.msk.bf16.gmra.mxu1 %vm473_vm2, %v405_v22  ;;  %v1522_v22 = vshll.u32 %v3772_v60, 16 }
  0x4b   : > { %3371 = vmatmul.msk.bf16.gmra.mxu2 %vm473_vm2, %v445_v63  ;;  %v1145_v63 = vsel %vm781_vm3, %v1142_v40, %v1144_v61 }
  0x4c   : > { %3361 = vmatmul.msk.bf16.gmra.mxu0 %vm473_vm2, %v365_v1  ;;  %v1524_v1 = vrot.slane %v1522_v22, 2 }
  0x4d   : > { %3486 = vmatmul.msk.bf16.vlgmr.msrb.gmra.mxu3 %vm473_vm2, %v1141_v23  ;;  %v787_v23 = vrot.slane %v4047_v17, 1 }
  0x4e   : > { %v1525_v3 = vor.u32 %v1524_v1, %v1521_v0 }
  0x4f   : > { %v788_v29 = vsel %vm781_vm3, %v785_v2, %v787_v23 }
  0x5a   : > { %3367 = vmatmul.msk.bf16.gmra.mxu1 %vm473_vm2, %v4059_v27  ;;  %v1515_v27 = vrot.slane %v1513_v43, 2  ;;  %v3759_v43 = vld [vmem:[%s3957_s27 + $0x38] sm:$0xff] }
  0x5b   : > { %3372 = vmatmul.msk.bf16.gmra.mxu2 %vm473_vm2, %v453_v33  ;;  %v3774_v33 = vld [vmem:[%s3957_s27 + $0x28] sm:$0xff]  ;;  %v1150_v51 = vrot.slane %v3759_v43, 1 }
  0x5c   : > { %3362 = vmatmul.msk.bf16.gmra.mxu0 %vm473_vm2, %v373_v49  ;;  %v783_v49 = vrot.slane %v3975_v13, 1  ;;  %v1516_v55 = vor.u32 %v1515_v27, %v1512_v52  ;;  %v1537_v35 = vshrl.u32 %v3774_v33, 16  ;;  %v1540_v36 = vshll.u32 %v3774_v33, 16 }
  0x5d   : > { %3487 = vmatmul.msk.bf16.gmra.mxu3 %vm473_vm2, %v1143_v47  ;;  %v1546_v52 = vshrl.u32 %v3775_v50, 16  ;;  %v1549_v27 = vshll.u32 %v3775_v50, 16  ;;  %v795_v50 = vrot.slane %v4002_v37, 1 }
  0x5e   : > { %v784_v56 = vsel %vm781_vm3, %v782_v53, %v783_v49  ;;  %v1517_v58 = vsel %vm1500_vm4, %v1508_v54, %v1516_v55  ;;  %v786_v4 = vsel %vm781_vm3, %v783_v49, %v785_v2  ;;  %v1539_v40 = vrot.slane %v1537_v35, 1  ;;  %v3776_v2 = vld [vmem:[%s3957_s27 + $0x38] sm:$0xff]  ;;  %v3777_v35 = vld [vmem:[%s3957_s27 + $0x40] sm:$0xff] }
  0x5f   : > { %v1542_v24 = vrot.slane %v1540_v36, 2  ;;  %v1151_v54 = vsel %vm781_vm3, %v1148_v34, %v1150_v51  ;;  %v1551_v57 = vrot.slane %v1549_v27, 2  ;;  %v1558_v7 = vshll.u32 %v3776_v2, 16 }
  0x61   : > { %v1543_v44 = vor.u32 %v1542_v24, %v1539_v40  ;;  %v1567_v40 = vshll.u32 %v3777_v35, 16 }
  0x63   : > { %v1544_v47 = vsel %vm1500_vm4, %v1534_v25, %v1543_v44 }
  0x6a   : > { %3376 = vmatmul.msk.bf16.vlgmr.msrb.gmra.mxu1 %vm473_vm2, %v3972_v12  ;;  %v1526_v12 = vsel %vm1500_vm4, %v1516_v55, %v1525_v3 }
  0x6b   : > { %3395 = vmatmul.msk.bf16.vlgmr.msrb.gmra.mxu2 %vm473_vm2, %v784_v56  ;;  %v1548_v56 = vrot.slane %v1546_v52, 1 }
  0x6c   : > { %3573 = vmatmul.msk.bf16.vlgmr.msrb.gmra.mxu0 %vm473_vm2, %v1517_v58 }
  0x6d   : > { %3488 = vmatmul.msk.bf16.gmra.mxu3 %vm473_vm2, %v1145_v63  ;;  %v1552_v58 = vor.u32 %v1551_v57, %v1548_v56  ;;  %v3760_v63 = vld [vmem:[%s3957_s27 + $0x40] sm:$0xff]  ;;  %v796_v56 = vsel %vm781_vm3, %v793_v20, %v795_v50  ;;  %v3762_v57 = vld [vmem:[%s3957_s27 + $0x50] sm:$0xff] }
  0x6f   : > { %v1553_v1 = vsel %vm1500_vm4, %v1543_v44, %v1552_v58 }
  0x7a   : > { %3377 = vmatmul.msk.bf16.gmra.mxu1 %vm473_vm2, %v3975_v13  ;;  %v1535_v13 = vsel %vm1500_vm4, %v1525_v3, %v1534_v25  ;;  %v1152_v3 = vrot.slane %v3760_v63, 1  ;;  %v1156_v63 = vrot.slane %v3762_v57, 1 }
  0x7b   : > { %3396 = vmatmul.msk.bf16.gmra.mxu2 %vm473_vm2, %v786_v4  ;;  %v1555_v4 = vshrl.u32 %v3776_v2, 16 }
  0x7c   : > { %3574 = vmatmul.msk.bf16.gmra.mxu0 %vm473_vm2, %v1526_v12  ;;  %v1153_v16 = vsel %vm781_vm3, %v1150_v51, %v1152_v3 }
  0x7d   : > { %3489 = vmatmul.msk.bf16.gmra.mxu3 %vm473_vm2, %v1147_v19  ;;  %v1560_v19 = vrot.slane %v1558_v7, 2 }
  0x8a   : > { %3378 = vmatmul.msk.bf16.gmra.mxu1 %vm473_vm2, %v4011_v42  ;;  %v790_v42 = vsel %vm781_vm3, %v787_v23, %v789_v41 }
  0x8b   : > { %3397 = vmatmul.msk.bf16.gmra.mxu2 %vm473_vm2, %v788_v29 }
  0x8c   : > { %3575 = vmatmul.msk.bf16.gmra.mxu0 %vm473_vm2, %v1535_v13  ;;  %v3761_v13 = vld [vmem:[%s3957_s27 + $0x48] sm:$0xff] }
  0x8d   : > { %3490 = vmatmul.msk.bf16.gmra.mxu3 %vm473_vm2, %v1149_v39  ;;  %v1154_v36 = vrot.slane %v3761_v13, 1  ;;  %v1564_v39 = vshrl.u32 %v3777_v35, 16 }
  0x97   : > { %v4163_v45 = vpop.f32.mrf.mxu1 }
  0x99   : > { %v4167_v46 = vpop.f32.mrf.mxu0 }
  0x9a   : > { %3379 = vmatmul.msk.bf16.gmra.mxu1 %vm473_vm2, %v4047_v17  ;;  %v791_v17 = vrot.slane %v3960_v8, 1 }
  0x9b   : > { %3398 = vmatmul.msk.bf16.gmra.mxu2 %vm473_vm2, %v790_v42  ;;  %v1155_v42 = vsel %vm781_vm3, %v1152_v3, %v1154_v36 }
  0x9c   : > { %3576 = vmatmul.msk.bf16.gmra.mxu0 %vm473_vm2, %v1544_v47  ;;  %v792_v22 = vsel %vm781_vm3, %v789_v41, %v791_v17  ;;  %v794_v30 = vsel %vm781_vm3, %v791_v17, %v793_v20  ;;  %v1569_v47 = vrot.slane %v1567_v40, 2  ;;  %v797_v20 = vrot.slane %v4039_v5, 1 }
  0x9d   : > { %3491 = vmatmul.msk.bf16.gmra.mxu3 %vm473_vm2, %v1151_v54 }
  0x9e   : > { %v4175_v53 = vpop.f32.mrf.mxu2  ;;  %v798_v35 = vsel %vm781_vm3, %v795_v50, %v797_v20 }
  0x9f   : > { %v4177_v49 = vpop.f32.mrf.mxu1 }
  0xa0   : > { %v4186_v61 = vpop.f32.mrf.mxu3 }
  0xa1   : > { %v4180_v55 = vpop.f32.mrf.mxu0  ;;  %5009 = vst [vmem:[#allocation2_spill] sm:$0xff] %v4186_v61  ;;  %v3781_v61 = vld [vmem:[%s3957_s27 + $0x60] sm:$0xff] }
  0xa6   : > { %v4184_v60 = vpop.f32.mrf.mxu2 }
  0xa7   : > { %v4188_v62 = vpop.f32.mrf.mxu1 }
  0xa8   : > { %v4202_v14 = vpop.f32.mrf.mxu3 }
  0xa9   : > { %v4192_v0 = vpop.f32.mrf.mxu0  ;;  %5010 = vst [vmem:[#allocation3_spill] sm:$0xff] %v4202_v14 }
  0xaa   : > { %3380 = vmatmul.msk.bf16.gmra.mxu1 %vm473_vm2, %v4055_v26  ;;  %v1557_v26 = vrot.slane %v1555_v4, 1 }
  0xab   : > { %3399 = vmatmul.msk.bf16.gmra.mxu2 %vm473_vm2, %v792_v22  ;;  %v3778_v22 = vld [vmem:[%s3957_s27 + $0x48] sm:$0xff] }
  0xac   : > { %3577 = vmatmul.msk.bf16.gmra.mxu0 %vm473_vm2, %v1553_v1  ;;  %v1561_v21 = vor.u32 %v1560_v19, %v1557_v26  ;;  %v1573_v1 = vshrl.u32 %v3778_v22, 16  ;;  %v1576_v2 = vshll.u32 %v3778_v22, 16 }
  0xad   : > { %3492 = vmatmul.msk.bf16.gmra.mxu3 %vm473_vm2, %v1153_v16  ;;  %v1157_v16 = vsel %vm781_vm3, %v1154_v36, %v1156_v63 }
  0xae   : > { %v4200_v12 = vpop.f32.mrf.mxu2  ;;  %v1562_v34 = vsel %vm1500_vm4, %v1552_v58, %v1561_v21  ;;  %v1578_v19 = vrot.slane %v1576_v2, 2  ;;  %v799_v2 = vrot.slane %v4029_v59, 1 }
  0xaf   : > { %v4204_v15 = vpop.f32.mrf.mxu1 }
  0xb0   : > { %v4213_v25 = vpop.f32.mrf.mxu3 }
  0xb1   : > { %v4207_v18 = vpop.f32.mrf.mxu0  ;;  %5011 = vst [vmem:[#allocation4_spill] sm:$0xff] %v4213_v25 }
  0xb6   : > { %v4211_v23 = vpop.f32.mrf.mxu2 }
  0xb7   : > { %v4215_v29 = vpop.f32.mrf.mxu1 }
  0xb8   : > { %v4229_v41 = vpop.f32.mrf.mxu3 }
  0xb9   : > { %v4219_v33 = vpop.f32.mrf.mxu0  ;;  %5012 = vst [vmem:[#allocation5_spill] sm:$0xff] %v4229_v41 }
  0xba   : > { %3381 = vmatmul.msk.bf16.gmra.mxu1 %vm473_vm2, %v3960_v8  ;;  %v1566_v8 = vrot.slane %v1564_v39, 1  ;;  %v3763_v39 = vld [vmem:[%s3957_s27 + $0x58] sm:$0xff] }
  0xbb   : > { %3400 = vmatmul.msk.bf16.gmra.mxu2 %vm473_vm2, %v794_v30 }
  0xbc   : > { %3578 = vmatmul.msk.bf16.gmra.mxu0 %vm473_vm2, %v1562_v34  ;;  %v1570_v51 = vor.u32 %v1569_v47, %v1566_v8  ;;  %v1158_v8 = vrot.slane %v3763_v39, 1  ;;  %v800_v39 = vsel %vm781_vm3, %v797_v20, %v799_v2 }
  0xbd   : > { %3493 = vmatmul.msk.bf16.gmra.mxu3 %vm473_vm2, %v1155_v42  ;;  %v3779_v42 = vld [vmem:[%s3957_s27 + $0x50] sm:$0xff] }
  0xbe   : > { %v4227_v24 = vpop.f32.mrf.mxu2  ;;  %v1571_v58 = vsel %vm1500_vm4, %v1561_v21, %v1570_v51  ;;  %v1582_v47 = vshrl.u32 %v3779_v42, 16 }
  0xbf   : > { %v4231_v44 = vpop.f32.mrf.mxu1 }
  0xc0   : > { %v4240_v27 = vpop.f32.mrf.mxu3 }
  0xc1   : > { %v4234_v43 = vpop.f32.mrf.mxu0  ;;  %5013 = vst [vmem:[#allocation6_spill] sm:$0xff] %v4240_v27 }
  0xc6   : > { %v4238_v52 = vpop.f32.mrf.mxu2 }
  0xc7   : > { %v4242_v54 = vpop.f32.mrf.mxu1 }
  0xc8   : > { %v4256_v4 = vpop.f32.mrf.mxu3 }
  0xc9   : > { %v4246_v17 = vpop.f32.mrf.mxu0  ;;  %5014 = vst [vmem:[#allocation7_spill] sm:$0xff] %v4256_v4 }
  0xca   : > { %3382 = vmatmul.msk.bf16.gmra.mxu1 %vm473_vm2, %v3963_v9  ;;  %v1575_v9 = vrot.slane %v1573_v1, 1  ;;  %v1584_v1 = vrot.slane %v1582_v47, 1 }
  0xcb   : > { %3401 = vmatmul.msk.bf16.gmra.mxu2 %vm473_vm2, %v796_v56  ;;  %v1585_v56 = vshll.u32 %v3779_v42, 16 }
  0xcc   : > { %3579 = vmatmul.msk.bf16.gmra.mxu0 %vm473_vm2, %v1571_v58  ;;  %v1579_v21 = vor.u32 %v1578_v19, %v1575_v9 }
  0xcd   : > { %3494 = vmatmul.msk.bf16.gmra.mxu3 %vm473_vm2, %v1157_v16 }
  0xce   : > { %v4254_v3 = vpop.f32.mrf.mxu2  ;;  %v1580_v36 = vsel %vm1500_vm4, %v1570_v51, %v1579_v21  ;;  %v1159_v51 = vsel %vm781_vm3, %v1156_v63, %v1158_v8  ;;  %v3780_v63 = vld [vmem:[%s3957_s27 + $0x58] sm:$0xff] }
  0xcf   : > { %v4258_v7 = vpop.f32.mrf.mxu1 }
  0xd0   : > { %v1240_v13 = vpop.f32.mrf.mxu3 }
  0xd1   : > { %v4261_v26 = vpop.f32.mrf.mxu0 }
  0xd6   : > { %v4265_v30 = vpop.f32.mrf.mxu2 }
  0xd7   : > { %v4267_v34 = vpop.f32.mrf.mxu1 }
  0xd8   : > { %v1242_v50 = vpop.f32.mrf.mxu3 }
  0xd9   : > { %v4271_v40 = vpop.f32.mrf.mxu0 }
  0xda   : > { %3383 = vmatmul.msk.bf16.gmra.mxu1 %vm473_vm2, %v4002_v37  ;;  %v1587_v37 = vrot.slane %v1585_v56, 2 }
  0xdb   : > { %3402 = vmatmul.msk.bf16.gmra.mxu2 %vm473_vm2, %v798_v35 }
  0xdc   : > { %3580 = vmatmul.msk.bf16.gmra.mxu0 %vm473_vm2, %v1580_v36  ;;  %v1588_v16 = vor.u32 %v1587_v37, %v1584_v1  ;;  %v3764_v36 = vld [vmem:[%s3957_s27 + $0x60] sm:$0xff]  ;;  %v1594_v1 = vshll.u32 %v3780_v63, 16 }
  0xdd   : > { %3495 = vmatmul.msk.bf16.gmra.mxu3 %vm473_vm2, %v1159_v51  ;;  %v1160_v47 = vrot.slane %v3764_v36, 1  ;;  %v1591_v51 = vshrl.u32 %v3780_v63, 16 }
  0xde   : > { %v4279_v57 = vpop.f32.mrf.mxu2  ;;  %v1589_v32 = vsel %vm1500_vm4, %v1579_v21, %v1588_v16 }
  0xdf   : > { %v4281_v58 = vpop.f32.mrf.mxu1  ;;  %v1161_v21 = vsel %vm781_vm3, %v1158_v8, %v1160_v47  ;;  %v1593_v14 = vrot.slane %v1591_v51, 1 }
  0xe0   : > { %v1245_v19 = vpop.f32.mrf.mxu3 }
  0xe1   : > { %v4284_v22 = vpop.f32.mrf.mxu0 }
  0xe6   : > { %v4288_v9 = vpop.f32.mrf.mxu2 }
  0xe7   : > { %v683_v35 = vpop.f32.mrf.mxu1 }
  0xe8   : > { %v684_v56 = vadd.f32 %v683_v35, %v4167_v46  ;;  %v1247_v4 = vpop.f32.mrf.mxu3  ;;  %v801_v46 = vrot.slane %v3966_v10, 1 }
  0xe9   : > { %v1733_v42 = vpop.f32.mrf.mxu0 }
  0xea   : > { %3384 = vmatmul.msk.bf16.gmra.mxu1 %vm473_vm2, %v4039_v5  ;;  %v1596_v5 = vrot.slane %v1594_v1, 2  ;;  %v802_v8 = vsel %vm781_vm3, %v799_v2, %v801_v46  ;;  %v1603_v2 = vshll.u32 %v3781_v61, 16 }
  0xeb   : > { %3403 = vmatmul.msk.bf16.gmra.mxu2 %vm473_vm2, %v800_v39 }
  0xec   : > { %3581 = vmatmul.msk.bf16.gmra.mxu0 %vm473_vm2, %v1589_v32  ;;  %v1597_v39 = vor.u32 %v1596_v5, %v1593_v14 }
  0xed   : > { %3496 = vmatmul.msk.bf16.gmra.mxu3 %vm473_vm2, %v1161_v21 }
  0xee   : > { %v883_v37 = vpop.f32.mrf.mxu2  ;;  %v1598_v1 = vsel %vm1500_vm4, %v1588_v16, %v1597_v39 }
  0xef   : > { %v973_v20 = vadd.f32 %v883_v37, %v684_v56  ;;  %v685_v27 = vpop.f32.mrf.mxu1 }
  0xf0   : > { %v686_v35 = vadd.f32 %v685_v27, %v4180_v55  ;;  %v1250_v63 = vpop.f32.mrf.mxu3  ;;  %v1600_v27 = vshrl.u32 %v3781_v61, 16 }
  0xf1   : > { %v1330_v41 = vadd.f32 %v1240_v13, %v973_v20  ;;  %v1735_v25 = vpop.f32.mrf.mxu0  ;;  %v3765_v13 = vld [vmem:[%s3957_s27 + $0x68] sm:$0xff] }
  0xf2   : > { %v1162_v55 = vrot.slane %v3765_v13, 1 }
  0xf3   : > { %v4301_v32 = vadd.f32 %v1733_v42, %v1330_v41 }
  0xf4   : > { %v1163_v16 = vsel %vm781_vm3, %v1160_v47, %v1162_v55 }
  0xf6   : > { %v885_v36 = vpop.f32.mrf.mxu2 }
  0xf7   : > { %v974_v56 = vadd.f32 %v885_v36, %v686_v35  ;;  %v688_v37 = vpop.f32.mrf.mxu1  ;;  %v1602_v36 = vrot.slane %v1600_v27, 1 }
  0xf8   : > { %v689_v14 = vadd.f32 %v688_v37, %v4192_v0  ;;  %v803_v0 = vrot.slane %v3969_v11, 1 }
  0xf9   : > { %v1331_v20 = vadd.f32 %v1242_v50, %v974_v56  ;;  %v1738_v51 = vpop.f32.mrf.mxu0  ;;  %v1252_v50 = vpop.f32.mrf.mxu3 }
  0xfa   : > { %3385 = vmatmul.msk.bf16.gmra.mxu1 %vm473_vm2, %v4029_v59  ;;  %v804_v47 = vsel %vm781_vm3, %v801_v46, %v803_v0 }
  0xfb   : > { %3404 = vmatmul.msk.bf16.gmra.mxu2 %vm473_vm2, %v802_v8  ;;  %v4312_v41 = vadd.f32 %v1735_v25, %v1331_v20  ;;  %v1605_v25 = vrot.slane %v1603_v2, 2 }
  0xfc   : > { %3582 = vmatmul.msk.bf16.gmra.mxu0 %vm473_vm2, %v1598_v1 }
  0xfd   : > { %3497 = vmatmul.msk.bf16.gmra.mxu3 %vm473_vm2, %v1163_v16  ;;  %v1606_v37 = vor.u32 %v1605_v25, %v1602_v36 }
  0xfe   : > { %v888_v42 = vpop.f32.mrf.mxu2 }
  0xff   : > { %v975_v21 = vadd.f32 %v888_v42, %v689_v14  ;;  %v690_v5 = vpop.f32.mrf.mxu1  ;;  %v1607_v2 = vsel %vm1500_vm4, %v1597_v39, %v1606_v37  ;;  %v3782_v42 = vld [vmem:[%s3957_s27 + $0x68] sm:$0xff] }
 0x100   : > { %v691_v61 = vadd.f32 %v690_v5, %v4207_v18  ;;  %v1609_v5 = vshrl.u32 %v3782_v42, 16  ;;  %v1612_v46 = vshll.u32 %v3782_v42, 16 }
 0x101   : > { %v1332_v35 = vadd.f32 %v1245_v19, %v975_v21  ;;  %v1740_v59 = vpop.f32.mrf.mxu0  ;;  %v1255_v13 = vpop.f32.mrf.mxu3  ;;  %v3766_v19 = vld [vmem:[%s3957_s27 + $0x70] sm:$0xff] }
 0x102   : > { %v1164_v18 = vrot.slane %v3766_v19, 1 }
 0x103   : > { %v4318_v56 = vadd.f32 %v1738_v51, %v1332_v35 }
 0x104   : > { %v1165_v39 = vsel %vm781_vm3, %v1162_v55, %v1164_v18 }
 0x106   : > { %v890_v8 = vpop.f32.mrf.mxu2 }
 0x107   : > { %v976_v20 = vadd.f32 %v890_v8, %v691_v61  ;;  %v693_v1 = vpop.f32.mrf.mxu1  ;;  %v1611_v61 = vrot.slane %v1609_v5, 1 }
 0x108   : > { %v694_v21 = vadd.f32 %v693_v1, %v4219_v33  ;;  %v805_v33 = vrot.slane %v4006_v38, 1 }
 0x109   : > { %v1333_v14 = vadd.f32 %v1247_v4, %v976_v20  ;;  %v1743_v27 = vpop.f32.mrf.mxu0  ;;  %v1257_v4 = vpop.f32.mrf.mxu3 }
 0x10a   : > { %3386 = vmatmul.msk.bf16.gmra.mxu1 %vm473_vm2, %v3966_v10  ;;  %v806_v55 = vsel %vm781_vm3, %v803_v0, %v805_v33 }
 0x10b   : > { %3405 = vmatmul.msk.bf16.gmra.mxu2 %vm473_vm2, %v804_v47  ;;  %v4329_v51 = vadd.f32 %v1740_v59, %v1333_v14  ;;  %v1614_v59 = vrot.slane %v1612_v46, 2  ;;  %v3783_v46 = vld [vmem:[%s3957_s27 + $0x70] sm:$0xff] }
 0x10c   : > { %3583 = vmatmul.msk.bf16.gmra.mxu0 %vm473_vm2, %v1607_v2  ;;  %v1621_v0 = vshll.u32 %v3783_v46, 16 }
 0x10d   : > { %3498 = vmatmul.msk.bf16.gmra.mxu3 %vm473_vm2, %v1165_v39  ;;  %v1615_v1 = vor.u32 %v1614_v59, %v1611_v61 }
 0x10e   : > { %v893_v16 = vpop.f32.mrf.mxu2 }
 0x10f   : > { %v977_v35 = vadd.f32 %v893_v16, %v694_v21  ;;  %v695_v36 = vpop.f32.mrf.mxu1  ;;  %v1616_v5 = vsel %vm1500_vm4, %v1606_v37, %v1615_v1 }
 0x110   : > { %v696_v20 = vadd.f32 %v695_v36, %v4234_v43 }
 0x111   : > { %v1334_v25 = vadd.f32 %v1250_v63, %v977_v35  ;;  %v1745_v10 = vpop.f32.mrf.mxu0  ;;  %v1260_v19 = vpop.f32.mrf.mxu3  ;;  %v3767_v63 = vld [vmem:[%s3957_s27 + $0x78] sm:$0xff]  ;;  %v1618_v35 = vshrl.u32 %v3783_v46, 16 }
 0x112   : > { %v1166_v43 = vrot.slane %v3767_v63, 1 }
 0x113   : > { %v4335_v8 = vadd.f32 %v1743_v27, %v1334_v25  ;;  %v1620_v59 = vrot.slane %v1618_v35, 1  ;;  %v3784_v35 = vld [vmem:[%s3957_s27 + $0x78] sm:$0xff] }
 0x114   : > { %v1167_v37 = vsel %vm781_vm3, %v1164_v18, %v1166_v43 }
 0x116   : > { %v895_v47 = vpop.f32.mrf.mxu2 }
 0x117   : > { %v978_v14 = vadd.f32 %v895_v47, %v696_v20  ;;  %v698_v2 = vpop.f32.mrf.mxu1 }
 0x118   : > { %v699_v16 = vadd.f32 %v698_v2, %v4246_v17  ;;  %v807_v17 = vrot.slane %v4043_v6, 1 }
 0x119   : > { %v1335_v42 = vadd.f32 %v1252_v50, %v978_v14  ;;  %v1748_v21 = vpop.f32.mrf.mxu0  ;;  %v1262_v50 = vpop.f32.mrf.mxu3 }
 0x11a   : > { %3387 = vmatmul.msk.bf16.gmra.mxu1 %vm473_vm2, %v3969_v11  ;;  %v808_v18 = vsel %vm781_vm3, %v805_v33, %v807_v17  ;;  %v1630_v33 = vshll.u32 %v3784_v35, 16 }
 0x11b   : > { %3406 = vmatmul.msk.bf16.gmra.mxu2 %vm473_vm2, %v806_v55  ;;  %v4346_v27 = vadd.f32 %v1745_v10, %v1335_v42  ;;  %v1623_v10 = vrot.slane %v1621_v0, 2 }
 0x11c   : > { %3584 = vmatmul.msk.bf16.gmra.mxu0 %vm473_vm2, %v1616_v5 }
 0x11d   : > { %3499 = vmatmul.msk.bf16.gmra.mxu3 %vm473_vm2, %v1167_v37  ;;  %v1624_v14 = vor.u32 %v1623_v10, %v1620_v59 }
 0x11e   : > { %v898_v36 = vpop.f32.mrf.mxu2 }
 0x11f   : > { %v979_v39 = vadd.f32 %v898_v36, %v699_v16  ;;  %v700_v25 = vpop.f32.mrf.mxu1  ;;  %v1625_v16 = vsel %vm1500_vm4, %v1615_v1, %v1624_v14  ;;  %v1627_v36 = vshrl.u32 %v3784_v35, 16 }
 0x120   : > { %v701_v47 = vadd.f32 %v700_v25, %v4261_v26 }
 0x121   : > { %v1336_v61 = vadd.f32 %v1255_v13, %v979_v39  ;;  %v1750_v11 = vpop.f32.mrf.mxu0  ;;  %v1265_v55 = vpop.f32.mrf.mxu3  ;;  %v3768_v13 = vld [vmem:[%s3957_s27 + $0x80] sm:$0xff]  ;;  %v1629_v59 = vrot.slane %v1627_v36, 1 }
 0x122   : > { %v1168_v26 = vrot.slane %v3768_v13, 1 }
 0x123   : > { %v4352_v20 = vadd.f32 %v1748_v21, %v1336_v61 }
 0x124   : > { %v1169_v1 = vsel %vm781_vm3, %v1166_v43, %v1168_v26 }
 0x126   : > { %v900_v2 = vpop.f32.mrf.mxu2 }
 0x127   : > { %v980_v63 = vadd.f32 %v900_v2, %v701_v47  ;;  %v703_v42 = vpop.f32.mrf.mxu1 }
 0x128   : > { %v704_v0 = vadd.f32 %v703_v42, %v4271_v40  ;;  %v809_v40 = vrot.slane %v4073_v48, 1 }
 0x129   : > { %v1337_v5 = vadd.f32 %v1257_v4, %v980_v63  ;;  %v1753_v46 = vpop.f32.mrf.mxu0  ;;  %v1267_v4 = vpop.f32.mrf.mxu3 }
 0x12a   : > { %3388 = vmatmul.msk.bf16.gmra.mxu1 %vm473_vm2, %v4006_v38  ;;  %v810_v43 = vsel %vm781_vm3, %v807_v17, %v809_v40 }
 0x12b   : > { %3407 = vmatmul.msk.bf16.gmra.mxu2 %vm473_vm2, %v808_v18  ;;  %v4363_v21 = vadd.f32 %v1750_v11, %v1337_v5  ;;  %v1632_v11 = vrot.slane %v1630_v33, 2 }
 0x12c   : > { %3585 = vmatmul.msk.bf16.gmra.mxu0 %vm473_vm2, %v1625_v16 }
 0x12d   : > { %3500 = vmatmul.msk.bf16.gmra.mxu3 %vm473_vm2, %v1169_v1  ;;  %v1633_v2 = vor.u32 %v1632_v11, %v1629_v59 }
 0x12e   : > { %v903_v39 = vpop.f32.mrf.mxu2 }
 0x12f   : > { %v981_v25 = vadd.f32 %v903_v39, %v704_v0  ;;  %v705_v37 = vpop.f32.mrf.mxu1  ;;  %v1634_v35 = vsel %vm1500_vm4, %v1624_v14, %v1633_v2  ;;  %v3785_v0 = vld [vmem:[%s3957_s27 + $0x80] sm:$0xff] }
 0x130   : > { %v706_v47 = vadd.f32 %v705_v37, %v4284_v22  ;;  %v1636_v33 = vshrl.u32 %v3785_v0, 16  ;;  %v1639_v17 = vshll.u32 %v3785_v0, 16  ;;  %v3786_v0 = vld [vmem:[%s3957_s27 + $0x88] sm:$0xff] }
 0x131   : > { %v1338_v61 = vadd.f32 %v1260_v19, %v981_v25  ;;  %v1755_v38 = vpop.f32.mrf.mxu0  ;;  %v1270_v42 = vpop.f32.mrf.mxu3  ;;  %v3769_v19 = vld [vmem:[%s3957_s27 + $0x88] sm:$0xff] }
 0x132   : > { %v1170_v22 = vrot.slane %v3769_v19, 1 }
 0x133   : > { %v4369_v10 = vadd.f32 %v1753_v46, %v1338_v61  ;;  %v1638_v61 = vrot.slane %v1636_v33, 1 }
 0x134   : > { %v1171_v14 = vsel %vm781_vm3, %v1168_v26, %v1170_v22 }
 0x136   : > { %v905_v63 = vpop.f32.mrf.mxu2 }
 0x137   : > { %v982_v18 = vadd.f32 %v905_v63, %v706_v47  ;;  %v708_v13 = vpop.f32.mrf.mxu1 }
 0x138   : > { %v709_v36 = vadd.f32 %v708_v13, %v4163_v45  ;;  %v811_v45 = vrot.slane %v3993_v31, 1 }
 0x139   : > { %v1339_v5 = vadd.f32 %v1262_v50, %v982_v18  ;;  %v1758_v16 = vpop.f32.mrf.mxu0  ;;  %v1272_v50 = vpop.f32.mrf.mxu3 }
 0x13a   : > { %3389 = vmatmul.msk.bf16.gmra.mxu1 %vm473_vm2, %v4043_v6  ;;  %v812_v26 = vsel %vm781_vm3, %v809_v40, %v811_v45  ;;  %v1645_v40 = vshrl.u32 %v3786_v0, 16 }
 0x13b   : > { %3408 = vmatmul.msk.bf16.gmra.mxu2 %vm473_vm2, %v810_v43  ;;  %v4380_v46 = vadd.f32 %v1755_v38, %v1339_v5  ;;  %v1641_v38 = vrot.slane %v1639_v17, 2 }
 0x13c   : > { %3586 = vmatmul.msk.bf16.gmra.mxu0 %vm473_vm2, %v1634_v35 }
 0x13d   : > { %3501 = vmatmul.msk.bf16.gmra.mxu3 %vm473_vm2, %v1171_v14  ;;  %v1642_v47 = vor.u32 %v1641_v38, %v1638_v61 }
 0x13e   : > { %v908_v39 = vpop.f32.mrf.mxu2 }
 0x13f   : > { %v983_v25 = vadd.f32 %v908_v39, %v709_v36  ;;  %v710_v37 = vpop.f32.mrf.mxu1  ;;  %v1643_v35 = vsel %vm1500_vm4, %v1633_v2, %v1642_v47  ;;  %v1648_v36 = vshll.u32 %v3786_v0, 16  ;;  %v3853_v0 = vld [vmem:[%s3957_s27 + $0x78] sm:$0xff] }
 0x140   : > { %v711_v11 = vadd.f32 %v710_v37, %v4177_v49  ;;  %v1647_v37 = vrot.slane %v1645_v40, 1 }
 0x141   : > { %v1340_v1 = vadd.f32 %v1265_v55, %v983_v25  ;;  %v1760_v6 = vpop.f32.mrf.mxu0  ;;  %v1275_v18 = vpop.f32.mrf.mxu3  ;;  %v3770_v55 = vld [vmem:[%s3957_s27 + $0x90] sm:$0xff]  ;;  %v1650_v14 = vrot.slane %v1648_v36, 2 }
 0x142   : > { %v1172_v49 = vrot.slane %v3770_v55, 1 }
 0x143   : > { %v4386_v59 = vadd.f32 %v1758_v16, %v1340_v1  ;;  %v1651_v38 = vor.u32 %v1650_v14, %v1647_v37 }
 0x144   : > { %v1173_v39 = vsel %vm781_vm3, %v1170_v22, %v1172_v49 }
 0x145   : > { %v1652_v55 = vsel %vm1500_vm4, %v1642_v47, %v1651_v38 }
 0x146   : > { %v910_v63 = vpop.f32.mrf.mxu2 }
 0x147   : > { %v984_v13 = vadd.f32 %v910_v63, %v711_v11  ;;  %v713_v43 = vpop.f32.mrf.mxu1 }
 0x148   : > { %v714_v16 = vadd.f32 %v713_v43, %v4188_v62  ;;  %v3852_v62 = vld [vmem:[%s3957_s27 + $0x80] sm:$0xff] }
 0x149   : > { %v1341_v19 = vadd.f32 %v1267_v4, %v984_v13  ;;  %v1763_v5 = vpop.f32.mrf.mxu0  ;;  %v4401_v33 = vpop.f32.mrf.mxu3 }
 0x14a   : > { %3390 = vmatmul.msk.bf16.gmra.mxu1 %vm473_vm2, %v4073_v48 }
 0x14b   : > { %3409 = vmatmul.msk.bf16.gmra.mxu2 %vm473_vm2, %v812_v26  ;;  %v4397_v31 = vadd.f32 %v1760_v6, %v1341_v19  ;;  %v813_v6 = vrot.slane %v3852_v62, 1  ;;  %v3787_v19 = vld [vmem:[%s3957_s27 + $0x90] sm:$0xff] }
 0x14c   : > { %3587 = vmatmul.msk.bf16.gmra.mxu0 %vm473_vm2, %v1643_v35  ;;  %v4416_v35 = vld [vmem:[%s3957_s27 + $0x14] sm:$0xf]  ;;  %v1657_v40 = vshll.u32 %v3787_v19, 16 }
 0x14d   : > { %3502 = vmatmul.msk.bf16.gmra.mxu3 %vm473_vm2, %v1173_v39  ;;  %v814_v13 = vsel %vm781_vm3, %v811_v45, %v813_v6  ;;  %v4429_v39 = vld [vmem:[%s3957_s27 + $0x18] sm:$0xff] }
 0x14e   : > { %v913_v4 = vpop.f32.mrf.mxu2 }
 0x14f   : > { %v985_v2 = vadd.f32 %v913_v4, %v714_v16  ;;  %v715_v17 = vpop.f32.mrf.mxu1  ;;  %v1654_v16 = vshrl.u32 %v3787_v19, 16 }
 0x150   : > { %v716_v61 = vadd.f32 %v715_v17, %v4204_v15 }
 0x151   : > { %v1342_v48 = vadd.f32 %v1270_v42, %v985_v2  ;;  %v1765_v25 = vpop.f32.mrf.mxu0  ;;  %v4409_v63 = vpop.f32.mrf.mxu3  ;;  %v1656_v14 = vrot.slane %v1654_v16, 1 }
 0x153   : > { %v4405_v1 = vadd.f32 %v1763_v5, %v1342_v48  ;;  %v2097_v5 = vld [vmem:[%s3957_s27 + $0x10] sm:$0xc] }
 0x154   : > { %v2175_v45 = vunpack.c.l.b16 %v2097_v5 }
 0x156   : > { %v915_v11 = vpop.f32.mrf.mxu2 }
 0x157   : > { %v986_v42 = vadd.f32 %v915_v11, %v716_v61  ;;  %v718_v22 = vpop.f32.mrf.mxu1  ;;  %v1659_v61 = vrot.slane %v1657_v40, 2  ;;  %v4436_v11 = vld [vmem:[%s3957_s27 + $0x88] sm:$0xff]  }
 0x158   : > { %v719_v47 = vadd.f32 %v718_v22, %v4215_v29  ;;  %v815_v29 = vrot.slane %v4436_v11, 1 }
 0x159   : > { %v1343_v43 = vadd.f32 %v1272_v50, %v986_v42  ;;  %v1768_v26 = vpop.f32.mrf.mxu0  ;;  %v5008_v50 = vunpack.c.l.b16 %v4416_v35  ;;  %v4426_v4 = vpop.f32.mrf.mxu3  ;;  %v1660_v19 = vor.u32 %v1659_v61, %v1656_v14 }
 0x15a   : > { %3391 = vmatmul.msk.bf16.gmra.mxu1 %vm473_vm2, %v3853_v0 }
 0x15b   : > { %3410 = vmatmul.msk.bf16.gmra.mxu2 %vm473_vm2, %v814_v13  ;;  %v4421_v15 = vadd.f32 %v1765_v25, %v1343_v43  ;;  %v4433_v48 = vpack.c.b16 %v5008_v50, %v2175_v45  ;;  %v2478_v43 = vshrl.u32 %v4429_v39, 16  ;;  %v1402_v45 = vld [vmem:[%s3957_s27 + $0x98] sm:$0x1]  ;;  %v1661_v50 = vsel %vm1500_vm4, %v1651_v38, %v1660_v19 }
 0x15c   : > { %3588 = vmatmul.msk.bf16.gmra.mxu0 %vm473_vm2, %v1652_v55 }
 0x15d   : > { %3503 = vmatmul.msk.bf16.gmra.mxu3 %vm473_vm2, %v1172_v49  ;;  %v2470_v22 = vshrl.u32 %v4433_v48, 16  ;;  %v2473_v13 = vshll.u32 %v4433_v48, 16  ;;  %v816_v49 = vsel %vm781_vm3, %v813_v6, %v815_v29 }
 0x15e   : > { %v918_v36 = vpop.f32.mrf.mxu2 }
 0x15f   : > { %v987_v2 = vadd.f32 %v918_v36, %v719_v47  ;;  %v720_v17 = vpop.f32.mrf.mxu1  ;;  %v2472_v16 = vrot.slane %v2470_v22, 2  ;;  %v2475_v40 = vrot.slane %v2473_v13, 3  ;;  %v2480_v36 = vrot.slane %v2478_v43, 2 }
 0x160   : > { %v721_v55 = vadd.f32 %v720_v17, %v4231_v44  ;;  %v1480_v44 = vunpack.c.l.b16 %v1402_v45  ;;  %v3821_v45 = vld [vmem:[%s3957_s27 + $0x88] sm:$0x70] }
 0x161   : > { %v1344_v25 = vadd.f32 %v1275_v18, %v987_v2  ;;  %v1770_v37 = vpop.f32.mrf.mxu0  ;;  %v2481_v18 = vshll.u32 %v4429_v39, 16  ;;  %v4447_v0 = vpop.f32.mrf.mxu3  ;;  %v2476_v6 = vor.u32 %v2475_v40, %v2472_v16 }
 0x163   : > { %v4440_v42 = vadd.f32 %v1768_v26, %v1344_v25  ;;  %v2483_v2 = vrot.slane %v2481_v18, 3 }
 0x165   : > { %v2484_v14 = vor.u32 %v2483_v2, %v2480_v36 }
 0x166   : > { %v920_v5 = vpop.f32.mrf.mxu2 }
 0x167   : > { %v988_v47 = vadd.f32 %v920_v5, %v721_v55  ;;  %v723_v26 = vpop.f32.mrf.mxu1  ;;  %v2485_v43 = vsel %vm2468_vm5, %v2476_v6, %v2484_v14  ;;  %v3816_v5 = vld [vmem:[%s3957_s27 + $0x88] sm:$0xf]  }
 0x168   : > { %v724_v61 = vadd.f32 %v723_v26, %v4242_v54  ;;  %v3817_v2 = vor.u32 %v3821_v45, %v3816_v5 }
 0x169   : > { %v1345_v25 = vadd.f32 %v4401_v33, %v988_v47  ;;  %v1773_v11 = vpop.f32.mrf.mxu0  ;;  %v4459_v33 = vpack.c.b16 %v1480_v44, %v1480_v44  ;;  %v4461_v22 = vpop.f32.mrf.mxu3  ;;  %v1859_v44 = vld [vmem:[%s3957_s27 + $0x8] sm:$0xc] }
 0x16a   : > { %3392 = vmatmul.msk.bf16.gmra.mxu1 %vm473_vm2, %v3852_v62 }
 0x16b   : > { %3411 = vmatmul.msk.bf16.gmra.mxu2 %vm473_vm2, %v816_v49  ;;  %v4455_v17 = vadd.f32 %v1770_v37, %v1345_v25  ;;  %v4465_v37 = vld [vmem:[%s3957_s27 + $0x20] sm:$0xff]  ;;  %v1663_v55 = vshll.u32 %v4459_v33, 16 }
 0x16c   : > { %3589 = vmatmul.msk.bf16.gmra.mxu0 %vm473_vm2, %v1661_v50  ;;  %v2487_v47 = vshrl.u32 %v4465_v37, 16  ;;  %v2490_v49 = vshll.u32 %v4465_v37, 16 }
 0x16d   : > { %3698 = vmatmul.msk.bf16.vlgmr.msra.gmra.mxu3 %vm473_vm2, %v2485_v43  ;;  %v1665_v16 = vrot.slane %v1663_v55, 2  ;;  %v2831_v43 = vld [vmem:[%s3957_s27 + $0x10] sm:$0x8] }
 0x16e   : > { %v923_v38 = vpop.f32.mrf.mxu2  ;;  %v2489_v6 = vrot.slane %v2487_v47, 2  ;;  %v2837_v5 = vunpack.c.l.b16 %v2831_v43  ;;  %v5015_v47 = vunpack.c.l.b16 %v4111_v28  ;;  %v2231_v28 = vrot.slane %v4433_v48, 2 }
 0x16f   : > { %v989_v13 = vadd.f32 %v923_v38, %v724_v61  ;;  %v725_v62 = vpop.f32.mrf.mxu1 }
 0x170   : > { %v726_v26 = vadd.f32 %v725_v62, %v4258_v7  ;;  %v1865_v7 = vunpack.c.l.b16 %v1859_v44 }
 0x171   : > { %v1346_v50 = vadd.f32 %v4409_v63, %v989_v13  ;;  %v1775_v18 = vpop.f32.mrf.mxu0  ;;  %v4477_v63 = vpop.f32.mrf.mxu3  ;;  %v1666_v13 = vsel %vm1500_vm4, %v1660_v19, %v1665_v16  ;;  %v4495_v16 = vld [vmem:[%s3957_s27 + $0x28] sm:$0xff] }
 0x173   : > { %v4470_v54 = vadd.f32 %v1773_v11, %v1346_v50  ;;  %v2492_v11 = vrot.slane %v2490_v49, 3  ;;  %v1866_v49 = vpack.c.b16 %v5015_v47, %v1865_v7 }
 0x175   : > { %v2493_v50 = vor.u32 %v2492_v11, %v2489_v6  ;;  %v2232_v11 = vrot.slane %v4429_v39, 2 }
 0x176   : > { %v925_v40 = vpop.f32.mrf.mxu2 }
 0x177   : > { %v990_v36 = vadd.f32 %v925_v40, %v726_v26  ;;  %v728_v25 = vpop.f32.mrf.mxu1  ;;  %v2233_v48 = vsel %vm1867_vm6, %v2231_v28, %v2232_v11 }
 0x178   : > { %v729_v55 = vadd.f32 %v728_v25, %v4267_v34  ;;  %v1868_v34 = vrot.slane %v1866_v49, 2  ;;  %v3855_v25 = vld [vmem:[%s3957_s27 + $0x10] sm:$0xff] }
 0x179   : > { %v1347_v61 = vadd.f32 %v4426_v4, %v990_v36  ;;  %v1778_v38 = vpop.f32.mrf.mxu0  ;;  %v4489_v45 = vpop.f32.mrf.mxu3  ;;  %v5016_v36 = vunpack.c.l.b16 %v4416_v35  ;;  %v1869_v44 = vrot.slane %v3855_v25, 2  ;;  %v4522_v25 = vld [vmem:[%s3957_s27 + $0x30] sm:$0xff] }
 0x17a   : > { %3393 = vmatmul.msk.bf16.gmra.mxu1 %vm473_vm2, %v3817_v2 }
 0x17b   : > { %3412 = vmatmul.msk.bf16.gmra.mxu2 %vm473_vm2, %v815_v29  ;;  %v4485_v62 = vadd.f32 %v1775_v18, %v1347_v61  ;;  %v2494_v29 = vsel %vm2468_vm5, %v2484_v14, %v2493_v50  ;;  %v2838_v2 = vpack.c.b16 %v5016_v36, %v2837_v5  ;;  %v2496_v14 = vshrl.u32 %v4495_v16, 16 }
 0x17c   : > { %3590 = vmatmul.msk.bf16.gmra.mxu0 %vm473_vm2, %v1666_v13  ;;  %v2499_v61 = vshll.u32 %v4495_v16, 16  ;;  %v2841_v13 = vrot.slane %v4429_v39, 3  ;;  %v1870_v5 = vsel %vm1867_vm6, %v1868_v34, %v1869_v44 }
 0x17d   : > { %3699 = vmatmul.msk.bf16.gmra.mxu3 %vm473_vm2, %v2494_v29  ;;  %v2840_v35 = vrot.slane %v2838_v2, 3 }
 0x17e   : > { %v928_v4 = vpop.f32.mrf.mxu2 }
 0x17f   : > { %v991_v19 = vadd.f32 %v928_v4, %v729_v55  ;;  %v730_v26 = vpop.f32.mrf.mxu1  ;;  %v2498_v4 = vrot.slane %v2496_v14, 2 }
 0x181   : > { %v1348_v18 = vadd.f32 %v4447_v0, %v991_v19  ;;  %v1780_v40 = vpop.f32.mrf.mxu0  ;;  %v731_v0 = vadd.f32 %v730_v26, %v4281_v58  ;;  %v1295_v7 = vpop.f32.mrf.mxu3  ;;  %v2501_v19 = vrot.slane %v2499_v61, 3  ;;  %v2842_v58 = vsel %vm2839_vm7, %v2840_v35, %v2841_v13  ;;  %v3856_v61 = vld [vmem:[%s3957_s27 + $0x18] sm:$0xff] }
 0x182   : > { %v2234_v35 = vrot.slane %v4465_v37, 2 }
 0x183   : > { %v4502_v6 = vadd.f32 %v1778_v38, %v1348_v18  ;;  %v2502_v26 = vor.u32 %v2501_v19, %v2498_v4 }
 0x184   : > { %v2235_v19 = vsel %vm1867_vm6, %v2232_v11, %v2234_v35 }
 0x186   : > { %v930_v43 = vpop.f32.mrf.mxu2 }
 0x187   : > { %v992_v55 = vadd.f32 %v930_v43, %v731_v0  ;;  %v733_v38 = vpop.f32.mrf.mxu1  ;;  %v1871_v0 = vrot.slane %v3856_v61, 2  ;;  %v2508_v43 = vshll.u32 %v4522_v25, 16 }
 0x188   : > { %v734_v29 = vadd.f32 %v733_v38, %v4175_v53  ;;  %v2505_v53 = vshrl.u32 %v4522_v25, 16 }
 0x189   : > { %v1349_v47 = vadd.f32 %v4461_v22, %v992_v55  ;;  %v1783_v49 = vpop.f32.mrf.mxu0  ;;  %v1297_v36 = vpop.f32.mrf.mxu3  ;;  %v2503_v22 = vsel %vm2468_vm5, %v2493_v50, %v2502_v26  ;;  %v2843_v50 = vrot.slane %v4465_v37, 3  ;;  %v1872_v4 = vsel %vm1867_vm6, %v1869_v44, %v1871_v0 }
 0x18a   : > { %3592 = vmatmul.msk.bf16.vlgmr.msra.gmra.mxu1 %vm473_vm2, %v1870_v5 }
 0x18b   : > { %3679 = vmatmul.msk.bf16.vlgmr.msra.gmra.mxu2 %vm473_vm2, %v2233_v48  ;;  %v4516_v39 = vadd.f32 %v1780_v40, %v1349_v47  ;;  %v2507_v47 = vrot.slane %v2505_v53, 2 }
 0x18c   : > { %3717 = vmatmul.msk.bf16.vlgmr.msra.gmra.mxu0 %vm473_vm2, %v2842_v58 }
 0x18d   : > { %3700 = vmatmul.msk.bf16.gmra.mxu3 %vm473_vm2, %v2503_v22 }
 0x18e   : > { %v933_v18 = vpop.f32.mrf.mxu2 }
 0x18f   : > { %v993_v2 = vadd.f32 %v933_v18, %v734_v29  ;;  %v735_v34 = vpop.f32.mrf.mxu1  ;;  %v2844_v18 = vsel %vm2839_vm7, %v2841_v13, %v2843_v50 }
 0x190   : > { %v736_v55 = vadd.f32 %v735_v34, %v4184_v60 }
 0x191   : > { %v1350_v28 = vadd.f32 %v4477_v63, %v993_v2  ;;  %v1785_v14 = vpop.f32.mrf.mxu0  ;;  %v1300_v5 = vpop.f32.mrf.mxu3 }
 0x193   : > { %v4526_v40 = vadd.f32 %v1783_v49, %v1350_v28  ;;  %v2510_v49 = vrot.slane %v2508_v43, 3  ;;  %v4546_v28 = vld [vmem:[%s3957_s27 + $0x38] sm:$0xff] }
 0x195   : > { %v2511_v37 = vor.u32 %v2510_v49, %v2507_v47 }
 0x196   : > { %v935_v38 = vpop.f32.mrf.mxu2 }
 0x197   : > { %v994_v63 = vadd.f32 %v935_v38, %v736_v55  ;;  %v738_v48 = vpop.f32.mrf.mxu1  ;;  %v2236_v55 = vrot.slane %v4495_v16, 2  ;;  %v2517_v38 = vshll.u32 %v4546_v28, 16 }
 0x198   : > { %v739_v44 = vadd.f32 %v738_v48, %v4200_v12  ;;  %v2514_v12 = vshrl.u32 %v4546_v28, 16 }
 0x199   : > { %v1351_v58 = vadd.f32 %v4489_v45, %v994_v63  ;;  %v1788_v29 = vpop.f32.mrf.mxu0  ;;  %v1302_v2 = vpop.f32.mrf.mxu3  ;;  %v2512_v45 = vsel %vm2468_vm5, %v2502_v26, %v2511_v37  ;;  %v2845_v26 = vrot.slane %v4495_v16, 3  ;;  %v2237_v49 = vsel %vm1867_vm6, %v2234_v35, %v2236_v55 }
 0x19a   : > { %3593 = vmatmul.msk.bf16.gmra.mxu1 %vm473_vm2, %v1872_v4 }
 0x19b   : > { %3680 = vmatmul.msk.bf16.gmra.mxu2 %vm473_vm2, %v2235_v19  ;;  %v4540_v60 = vadd.f32 %v1785_v14, %v1351_v58  ;;  %v3857_v14 = vld [vmem:[%s3957_s27 + $0x20] sm:$0xff]  ;;  %v2516_v58 = vrot.slane %v2514_v12, 2 }
 0x19c   : > { %3718 = vmatmul.msk.bf16.gmra.mxu0 %vm473_vm2, %v2844_v18  ;;  %v1873_v43 = vrot.slane %v3857_v14, 2 }
 0x19d   : > { %3701 = vmatmul.msk.bf16.gmra.mxu3 %vm473_vm2, %v2512_v45 }
 0x19e   : > { %v938_v11 = vpop.f32.mrf.mxu2  ;;  %v1874_v47 = vsel %vm1867_vm6, %v1871_v0, %v1873_v43 }
 0x19f   : > { %v995_v34 = vadd.f32 %v938_v11, %v739_v44  ;;  %v740_v22 = vpop.f32.mrf.mxu1  ;;  %v2846_v11 = vsel %vm2839_vm7, %v2843_v50, %v2845_v26 }
 0x1a0   : > { %v741_v63 = vadd.f32 %v740_v22, %v4211_v23 }
 0x1a1   : > { %v1352_v13 = vadd.f32 %v1295_v7, %v995_v34  ;;  %v1790_v61 = vpop.f32.mrf.mxu0  ;;  %v1305_v4 = vpop.f32.mrf.mxu3 }
 0x1a3   : > { %v4549_v53 = vadd.f32 %v1788_v29, %v1352_v13  ;;  %v2519_v29 = vrot.slane %v2517_v38, 3  ;;  %v4568_v13 = vld [vmem:[%s3957_s27 + $0x40] sm:$0xff] }
 0x1a5   : > { %v2520_v16 = vor.u32 %v2519_v29, %v2516_v58 }
 0x1a6   : > { %v940_v48 = vpop.f32.mrf.mxu2 }
 0x1a7   : > { %v996_v7 = vadd.f32 %v940_v48, %v741_v63  ;;  %v743_v19 = vpop.f32.mrf.mxu1  ;;  %v2238_v63 = vrot.slane %v4522_v25, 2  ;;  %v2526_v48 = vshll.u32 %v4568_v13, 16 }
 0x1a8   : > { %v744_v0 = vadd.f32 %v743_v19, %v4227_v24  ;;  %v2523_v24 = vshrl.u32 %v4568_v13, 16 }
 0x1a9   : > { %v1353_v18 = vadd.f32 %v1297_v36, %v996_v7  ;;  %v1793_v44 = vpop.f32.mrf.mxu0  ;;  %v1307_v34 = vpop.f32.mrf.mxu3  ;;  %v2521_v36 = vsel %vm2468_vm5, %v2511_v37, %v2520_v16  ;;  %v2847_v37 = vrot.slane %v4522_v25, 3  ;;  %v2239_v29 = vsel %vm1867_vm6, %v2236_v55, %v2238_v63 }
 0x1aa   : > { %3594 = vmatmul.msk.bf16.gmra.mxu1 %vm473_vm2, %v1874_v47 }
 0x1ab   : > { %3681 = vmatmul.msk.bf16.gmra.mxu2 %vm473_vm2, %v2237_v49  ;;  %v4562_v23 = vadd.f32 %v1790_v61, %v1353_v18  ;;  %v3858_v61 = vld [vmem:[%s3957_s27 + $0x28] sm:$0xff]  ;;  %v2525_v18 = vrot.slane %v2523_v24, 2 }
 0x1ac   : > { %3719 = vmatmul.msk.bf16.gmra.mxu0 %vm473_vm2, %v2846_v11  ;;  %v1875_v38 = vrot.slane %v3858_v61, 2 }
 0x1ad   : > { %3702 = vmatmul.msk.bf16.gmra.mxu3 %vm473_vm2, %v2521_v36 }
 0x1ae   : > { %v943_v35 = vpop.f32.mrf.mxu2  ;;  %v1876_v58 = vsel %vm1867_vm6, %v1873_v43, %v1875_v38 }
 0x1af   : > { %v997_v22 = vadd.f32 %v943_v35, %v744_v0  ;;  %v745_v45 = vpop.f32.mrf.mxu1  ;;  %v2848_v35 = vsel %vm2839_vm7, %v2845_v26, %v2847_v37 }
 0x1b0   : > { %v746_v7 = vadd.f32 %v745_v45, %v4238_v52 }
 0x1b1   : > { %v1354_v50 = vadd.f32 %v1300_v5, %v997_v22  ;;  %v1795_v14 = vpop.f32.mrf.mxu0  ;;  %v1310_v47 = vpop.f32.mrf.mxu3 }
 0x1b3   : > { %v4571_v12 = vadd.f32 %v1793_v44, %v1354_v50  ;;  %v2528_v44 = vrot.slane %v2526_v48, 3  ;;  %v4590_v50 = vld [vmem:[%s3957_s27 + $0x48] sm:$0xff] }
 0x1b5   : > { %v2529_v25 = vor.u32 %v2528_v44, %v2525_v18 }
 0x1b6   : > { %v945_v19 = vpop.f32.mrf.mxu2 }
 0x1b7   : > { %v998_v5 = vadd.f32 %v945_v19, %v746_v7  ;;  %v748_v49 = vpop.f32.mrf.mxu1  ;;  %v2240_v7 = vrot.slane %v4546_v28, 2  ;;  %v2535_v19 = vshll.u32 %v4590_v50, 16 }
 0x1b8   : > { %v749_v43 = vadd.f32 %v748_v49, %v4254_v3  ;;  %v2532_v3 = vshrl.u32 %v4590_v50, 16 }
 0x1b9   : > { %v1355_v11 = vadd.f32 %v1302_v2, %v998_v5  ;;  %v1798_v0 = vpop.f32.mrf.mxu0  ;;  %v1312_v22 = vpop.f32.mrf.mxu3  ;;  %v2530_v2 = vsel %vm2468_vm5, %v2520_v16, %v2529_v25  ;;  %v2849_v16 = vrot.slane %v4546_v28, 3  ;;  %v2241_v44 = vsel %vm1867_vm6, %v2238_v63, %v2240_v7 }
 0x1ba   : > { %3595 = vmatmul.msk.bf16.gmra.mxu1 %vm473_vm2, %v1876_v58 }
 0x1bb   : > { %3682 = vmatmul.msk.bf16.gmra.mxu2 %vm473_vm2, %v2239_v29  ;;  %v4584_v52 = vadd.f32 %v1795_v14, %v1355_v11  ;;  %v3859_v14 = vld [vmem:[%s3957_s27 + $0x30] sm:$0xff]  ;;  %v2534_v11 = vrot.slane %v2532_v3, 2 }
 0x1bc   : > { %3720 = vmatmul.msk.bf16.gmra.mxu0 %vm473_vm2, %v2848_v35  ;;  %v1877_v48 = vrot.slane %v3859_v14, 2 }
 0x1bd   : > { %3703 = vmatmul.msk.bf16.gmra.mxu3 %vm473_vm2, %v2530_v2 }
 0x1be   : > { %v948_v55 = vpop.f32.mrf.mxu2  ;;  %v1878_v18 = vsel %vm1867_vm6, %v1875_v38, %v1877_v48 }
 0x1bf   : > { %v999_v45 = vadd.f32 %v948_v55, %v749_v43  ;;  %v750_v36 = vpop.f32.mrf.mxu1  ;;  %v2850_v55 = vsel %vm2839_vm7, %v2847_v37, %v2849_v16 }
 0x1c0   : > { %v751_v5 = vadd.f32 %v750_v36, %v4265_v30 }
 0x1c1   : > { %v1356_v26 = vadd.f32 %v1305_v4, %v999_v45  ;;  %v1800_v61 = vpop.f32.mrf.mxu0  ;;  %v1315_v58 = vpop.f32.mrf.mxu3 }
 0x1c3   : > { %v4593_v24 = vadd.f32 %v1798_v0, %v1356_v26  ;;  %v2537_v0 = vrot.slane %v2535_v19, 3  ;;  %v4612_v26 = vld [vmem:[%s3957_s27 + $0x50] sm:$0xff] }
 0x1c5   : > { %v2538_v28 = vor.u32 %v2537_v0, %v2534_v11 }
 0x1c6   : > { %v950_v49 = vpop.f32.mrf.mxu2 }
 0x1c7   : > { %v1000_v4 = vadd.f32 %v950_v49, %v751_v5  ;;  %v753_v29 = vpop.f32.mrf.mxu1  ;;  %v2242_v5 = vrot.slane %v4568_v13, 2  ;;  %v2544_v49 = vshll.u32 %v4612_v26, 16 }
 0x1c8   : > { %v754_v38 = vadd.f32 %v753_v29, %v4279_v57  ;;  %v2541_v57 = vshrl.u32 %v4612_v26, 16 }
 0x1c9   : > { %v1357_v35 = vadd.f32 %v1307_v34, %v1000_v4  ;;  %v1803_v43 = vpop.f32.mrf.mxu0  ;;  %v1317_v45 = vpop.f32.mrf.mxu3  ;;  %v2539_v34 = vsel %vm2468_vm5, %v2529_v25, %v2538_v28  ;;  %v2851_v25 = vrot.slane %v4568_v13, 3  ;;  %v2243_v0 = vsel %vm1867_vm6, %v2240_v7, %v2242_v5 }
 0x1ca   : > { %3596 = vmatmul.msk.bf16.gmra.mxu1 %vm473_vm2, %v1878_v18 }
 0x1cb   : > { %3683 = vmatmul.msk.bf16.gmra.mxu2 %vm473_vm2, %v2241_v44  ;;  %v4606_v30 = vadd.f32 %v1800_v61, %v1357_v35  ;;  %v3860_v61 = vld [vmem:[%s3957_s27 + $0x38] sm:$0xff]  ;;  %v2543_v35 = vrot.slane %v2541_v57, 2 }
 0x1cc   : > { %3721 = vmatmul.msk.bf16.gmra.mxu0 %vm473_vm2, %v2850_v55  ;;  %v1879_v19 = vrot.slane %v3860_v61, 2  ;;  %v4634_v61 = vld [vmem:[%s3957_s27 + $0x58] sm:$0xff] }
 0x1cd   : > { %3704 = vmatmul.msk.bf16.gmra.mxu3 %vm473_vm2, %v2539_v34 }
 0x1ce   : > { %v953_v63 = vpop.f32.mrf.mxu2  ;;  %v1880_v11 = vsel %vm1867_vm6, %v1877_v48, %v1879_v19  ;;  %v5017_v48 = vld [vmem:[#allocation2_spill] sm:$0xff] }
 0x1cf   : > { %v1001_v36 = vadd.f32 %v953_v63, %v754_v38  ;;  %v755_v2 = vpop.f32.mrf.mxu1  ;;  %v2852_v63 = vsel %vm2839_vm7, %v2849_v16, %v2851_v25 }
 0x1d0   : > { %v756_v4 = vadd.f32 %v755_v2, %v4288_v9 }
 0x1d1   : > { %v1358_v37 = vadd.f32 %v1310_v47, %v1001_v36  ;;  %v1805_v14 = vpop.f32.mrf.mxu0  ;;  %v1320_v18 = vpop.f32.mrf.mxu3 }
 0x1d3   : > { %v4615_v3 = vadd.f32 %v1803_v43, %v1358_v37  ;;  %v2546_v43 = vrot.slane %v2544_v49, 3 }
 0x1d5   : > { %v2547_v13 = vor.u32 %v2546_v43, %v2543_v35 }
 0x1d6   : > { %v955_v29 = vpop.f32.mrf.mxu2 }
 0x1d7   : > { %v1002_v47 = vadd.f32 %v955_v29, %v756_v4  ;;  %v758_v44 = vpop.f32.mrf.mxu1  ;;  %v2244_v29 = vrot.slane %v4590_v50, 2 }
 0x1d8   : > { %v759_v36 = vadd.f32 %v758_v44, %v5017_v48  ;;  %v2553_v44 = vshll.u32 %v4634_v61, 16 }
 0x1d9   : > { %v1359_v55 = vadd.f32 %v1312_v22, %v1002_v47  ;;  %v1808_v38 = vpop.f32.mrf.mxu0  ;;  %v1322_v2 = vpop.f32.mrf.mxu3  ;;  %v2548_v22 = vsel %vm2468_vm5, %v2538_v28, %v2547_v13  ;;  %v2550_v47 = vshrl.u32 %v4634_v61, 16  ;;  %v2853_v28 = vrot.slane %v4590_v50, 3 }
 0x1da   : > { %3597 = vmatmul.msk.bf16.gmra.mxu1 %vm473_vm2, %v1880_v11  ;;  %v5018_v11 = vld [vmem:[#allocation3_spill] sm:$0xff] }
 0x1db   : > { %3684 = vmatmul.msk.bf16.gmra.mxu2 %vm473_vm2, %v2243_v0  ;;  %v4628_v9 = vadd.f32 %v1805_v14, %v1359_v55  ;;  %v3861_v14 = vld [vmem:[%s3957_s27 + $0x40] sm:$0xff]  ;;  %v2552_v48 = vrot.slane %v2550_v47, 2 }
 0x1dc   : > { %3722 = vmatmul.msk.bf16.gmra.mxu0 %vm473_vm2, %v2852_v63  ;;  %v1881_v4 = vrot.slane %v3861_v14, 2 }
 0x1dd   : > { %3705 = vmatmul.msk.bf16.gmra.mxu3 %vm473_vm2, %v2548_v22  ;;  %v2854_v22 = vsel %vm2839_vm7, %v2851_v25, %v2853_v28 }
 0x1de   : > { %v958_v7 = vpop.f32.mrf.mxu2  ;;  %v1882_v63 = vsel %vm1867_vm6, %v1879_v19, %v1881_v4  ;;  %v5019_v19 = vld [vmem:[#allocation4_spill] sm:$0xff] }
 0x1df   : > { %v1003_v34 = vadd.f32 %v958_v7, %v759_v36  ;;  %v760_v37 = vpop.f32.mrf.mxu1  ;;  %v2555_v36 = vrot.slane %v2553_v44, 3 }
 0x1e0   : > { %v761_v0 = vadd.f32 %v760_v37, %v5018_v11  ;;  %v4656_v11 = vld [vmem:[%s3957_s27 + $0x60] sm:$0xff] }
 0x1e1   : > { %v1360_v16 = vadd.f32 %v1315_v58, %v1003_v34  ;;  %v1810_v57 = vpop.f32.mrf.mxu0  ;;  %v1325_v43 = vpop.f32.mrf.mxu3  ;;  %v2556_v37 = vor.u32 %v2555_v36, %v2552_v48  ;;  %v5020_v48 = vld [vmem:[#allocation5_spill] sm:$0xff] }
 0x1e3   : > { %v4637_v49 = vadd.f32 %v1808_v38, %v1360_v16  ;;  %v2245_v38 = vsel %vm1867_vm6, %v2242_v5, %v2244_v29 }
 0x1e6   : > { %v960_v35 = vpop.f32.mrf.mxu2 }
 0x1e7   : > { %v1004_v58 = vadd.f32 %v960_v35, %v761_v0  ;;  %v763_v55 = vpop.f32.mrf.mxu1 }
 0x1e8   : > { %v764_v16 = vadd.f32 %v763_v55, %v5019_v19  ;;  %v2559_v55 = vshrl.u32 %v4656_v11, 16 }
 0x1e9   : > { %v1361_v7 = vadd.f32 %v1317_v45, %v1004_v58  ;;  %v1813_v34 = vpop.f32.mrf.mxu0  ;;  %v1327_v14 = vpop.f32.mrf.mxu3  ;;  %v2557_v45 = vsel %vm2468_vm5, %v2547_v13, %v2556_v37  ;;  %v2855_v13 = vrot.slane %v4612_v26, 3 }
 0x1ea   : > { %3598 = vmatmul.msk.bf16.gmra.mxu1 %vm473_vm2, %v1882_v63  ;;  %v2246_v63 = vrot.slane %v4612_v26, 2 }
 0x1eb   : > { %3685 = vmatmul.msk.bf16.gmra.mxu2 %vm473_vm2, %v2245_v38  ;;  %v4650_v50 = vadd.f32 %v1810_v57, %v1361_v7  ;;  %v3862_v57 = vld [vmem:[%s3957_s27 + $0x48] sm:$0xff]  ;;  %v2562_v38 = vshll.u32 %v4656_v11, 16 }
 0x1ec   : > { %3723 = vmatmul.msk.bf16.gmra.mxu0 %vm473_vm2, %v2854_v22  ;;  %v1883_v58 = vrot.slane %v3862_v57, 2  ;;  %v2856_v57 = vsel %vm2839_vm7, %v2853_v28, %v2855_v13  ;;  %v4680_v28 = vld [vmem:[%s3957_s27 + $0x68] sm:$0xff] }
 0x1ed   : > { %3706 = vmatmul.msk.bf16.gmra.mxu3 %vm473_vm2, %v2557_v45 }
 0x1ee   : > { %v963_v5 = vpop.f32.mrf.mxu2 }
 0x1ef   : > { %v1005_v47 = vadd.f32 %v963_v5, %v764_v16  ;;  %v765_v44 = vpop.f32.mrf.mxu1  ;;  %v1884_v16 = vsel %vm1867_vm6, %v1881_v4, %v1883_v58  ;;  %v2561_v5 = vrot.slane %v2559_v55, 2  ;;  %v5022_v4 = vld [vmem:[#allocation6_spill] sm:$0xff] }
 0x1f0   : > { %v766_v36 = vadd.f32 %v765_v44, %v5020_v48 }
 0x1f1   : > { %v1362_v25 = vadd.f32 %v1320_v18, %v1005_v47  ;;  %v1815_v0 = vpop.f32.mrf.mxu0  ;;  %v2705_v22 = vpop.f32.mrf.mxu3  ;;  %v2564_v47 = vrot.slane %v2562_v38, 3 }
 0x1f3   : > { %v4659_v35 = vadd.f32 %v1813_v34, %v1362_v25  ;;  %v2247_v34 = vsel %vm1867_vm6, %v2244_v29, %v2246_v63  ;;  %v2565_v44 = vor.u32 %v2564_v47, %v2561_v5  ;;  %v2248_v5 = vrot.slane %v4634_v61, 2 }
 0x1f4   : > { %v2571_v47 = vshll.u32 %v4680_v28, 16 }
 0x1f6   : > { %v965_v7 = vpop.f32.mrf.mxu2 }
 0x1f7   : > { %v1006_v18 = vadd.f32 %v965_v7, %v766_v36  ;;  %v768_v19 = vpop.f32.mrf.mxu1  ;;  %v2566_v36 = vsel %vm2468_vm5, %v2556_v37, %v2565_v44  ;;  %v2857_v37 = vrot.slane %v4634_v61, 3 }
 0x1f8   : > { %v769_v48 = vadd.f32 %v768_v19, %v5022_v4  ;;  %v2568_v19 = vshrl.u32 %v4680_v28, 16 }
 0x1f9   : > { %v1363_v45 = vadd.f32 %v1322_v2, %v1006_v18  ;;  %v1818_v25 = vpop.f32.mrf.mxu0  ;;  %v4676_v55 = vpop.f32.mrf.mxu3 }
 0x1fa   : > { %3599 = vmatmul.msk.bf16.gmra.mxu1 %vm473_vm2, %v1884_v16  ;;  %v3863_v16 = vld [vmem:[%s3957_s27 + $0x50] sm:$0xff] }
 0x1fb   : > { %3686 = vmatmul.msk.bf16.gmra.mxu2 %vm473_vm2, %v2247_v34  ;;  %v4672_v26 = vadd.f32 %v1815_v0, %v1363_v45  ;;  %v1885_v34 = vrot.slane %v3863_v16, 2  ;;  %v5024_v45 = vld [vmem:[#allocation7_spill] sm:$0xff] }
 0x1fc   : > { %3724 = vmatmul.msk.bf16.gmra.mxu0 %vm473_vm2, %v2856_v57 }
 0x1fd   : > { %5021 = vst [vmem:[#allocation2_spill] sm:$0xff] %v4672_v26  ;;  %3707 = vmatmul.msk.bf16.gmra.mxu3 %vm473_vm2, %v2566_v36  ;;  %v2570_v36 = vrot.slane %v2568_v19, 2  ;;  %v2858_v26 = vsel %vm2839_vm7, %v2855_v13, %v2857_v37 }
 0x1fe   : > { %v968_v29 = vpop.f32.mrf.mxu2 }
 0x1ff   : > { %v1007_v38 = vadd.f32 %v968_v29, %v769_v48  ;;  %v770_v2 = vpop.f32.mrf.mxu1 }
 0x200   : > { %v771_v57 = vadd.f32 %v770_v2, %v5024_v45  ;;  %v4706_v45 = vld [vmem:[%s3957_s27 + $0x70] sm:$0xff] }
 0x201   : > { %v1364_v7 = vadd.f32 %v1325_v43, %v1007_v38  ;;  %v1820_v18 = vpop.f32.mrf.mxu0  ;;  %v4691_v48 = vpop.f32.mrf.mxu3  ;;  %v2249_v38 = vsel %vm1867_vm6, %v2246_v63, %v2248_v5 }
 0x203   : > { %v4683_v0 = vadd.f32 %v1818_v25, %v1364_v7  ;;  %v1886_v25 = vsel %vm1867_vm6, %v1883_v58, %v1885_v34  ;;  %v2573_v7 = vrot.slane %v2571_v47, 3 }
 0x205   : > { %5023 = vst [vmem:[#allocation3_spill] sm:$0xff] %v4683_v0  ;;  %v2574_v58 = vor.u32 %v2573_v7, %v2570_v36  ;;  %v2859_v36 = vrot.slane %v4656_v11, 3 }
 0x206   : > { %v970_v4 = vpop.f32.mrf.mxu2 }
 0x207   : > { %v1008_v43 = vadd.f32 %v970_v4, %v771_v57  ;;  %v1971_v29 = vpop.f32.mrf.mxu1  ;;  %v2575_v13 = vsel %vm2468_vm5, %v2565_v44, %v2574_v58  ;;  %v2580_v44 = vshll.u32 %v4706_v45, 16 }
 0x208   : > { %v2061_v63 = vadd.f32 %v1971_v29, %v4301_v32  ;;  %v3864_v32 = vld [vmem:[%s3957_s27 + $0x58] sm:$0xff]  ;;  %v2250_v29 = vrot.slane %v4656_v11, 2 }
 0x209   : > { %v1365_v16 = vadd.f32 %v1327_v14, %v1008_v43  ;;  %v2943_v0 = vpop.f32.mrf.mxu0  ;;  %v4702_v19 = vpop.f32.mrf.mxu3  ;;  %v1887_v43 = vrot.slane %v3864_v32, 2 }
 0x20a   : > { %3600 = vmatmul.msk.bf16.gmra.mxu1 %vm473_vm2, %v1886_v25  ;;  %v2577_v25 = vshrl.u32 %v4706_v45, 16 }
 0x20b   : > { %3687 = vmatmul.msk.bf16.gmra.mxu2 %vm473_vm2, %v2249_v38  ;;  %v4698_v61 = vadd.f32 %v1820_v18, %v1365_v16  ;;  %v4711_v18 = vld [vmem:[%s5005_s2] ss:$0 sm:$0xff] }
 0x20c   : > { %3725 = vmatmul.msk.bf16.gmra.mxu0 %vm473_vm2, %v2858_v26 }
 0x20d   : > { %3708 = vmatmul.msk.bf16.gmra.mxu3 %vm473_vm2, %v2575_v13  ;;  %v2251_v13 = vsel %vm1867_vm6, %v2248_v5, %v2250_v29 }
 0x20e   : > { %v2334_v2 = vpop.f32.mrf.mxu2 }
 0x20f   : > { %v2424_v14 = vadd.f32 %v2334_v2, %v2061_v63  ;;  %v1973_v47 = vpop.f32.mrf.mxu1 }
 0x210   : > { %v2062_v38 = vadd.f32 %v1973_v47, %v4312_v41  ;;  %v2582_v41 = vrot.slane %v2580_v44, 3 }
 0x211   : > { %v2795_v57 = vadd.f32 %v2705_v22, %v2424_v14  ;;  %v2945_v4 = vpop.f32.mrf.mxu0  ;;  %v4727_v7 = vpop.f32.mrf.mxu3  ;;  %v1888_v14 = vsel %vm1867_vm6, %v1885_v34, %v1887_v43 }
 0x213   : > { %v3033_v26 = vadd.f32 %v2943_v0, %v2795_v57  ;;  %v2579_v57 = vrot.slane %v2577_v25, 2 }
 0x215   : > { %v3074_v22 = vadd.f32 %v4711_v18, %v3033_v26  ;;  %v2860_v26 = vsel %vm2839_vm7, %v2857_v37, %v2859_v36  ;;  %v2583_v34 = vor.u32 %v2582_v41, %v2579_v57 }
 0x216   : > { %v2336_v0 = vpop.f32.mrf.mxu2 }
 0x217   : > { %v3110_v16 = vmax.f32 %v3074_v22, 0.0  ;;  %v2425_v63 = vadd.f32 %v2336_v0, %v2062_v38  ;;  %v1976_v2 = vpop.f32.mrf.mxu1  ;;  %v2584_v37 = vsel %vm2468_vm5, %v2574_v58, %v2583_v34 }
 0x218   : > { %v2063_v25 = vadd.f32 %v1976_v2, %v4318_v56  ;;  %v2252_v56 = vrot.slane %v4680_v28, 2 }
 0x219   : > { %3146 = vst [vmem:[%s4725_s12] sm:$0xff] %v3110_v16  ;;  %v2796_v11 = vadd.f32 %v4676_v55, %v2425_v63  ;;  %v2948_v47 = vpop.f32.mrf.mxu0  ;;  %v4739_v55 = vpop.f32.mrf.mxu3 }
 0x21a   : > { %3601 = vmatmul.msk.bf16.gmra.mxu1 %vm473_vm2, %v1888_v14 }
 0x21b   : > { %v3034_v32 = vadd.f32 %v2945_v4, %v2796_v11  ;;  %3688 = vmatmul.msk.bf16.gmra.mxu2 %vm473_vm2, %v2251_v13  ;;  %v4743_v4 = vld [vmem:[%s3957_s27 + $0x78] sm:$0xff]  ;;  %v3865_v13 = vld [vmem:[%s3957_s27 + $0x60] sm:$0xff] }
 0x21c   : > { %3726 = vmatmul.msk.bf16.gmra.mxu0 %vm473_vm2, %v2860_v26  ;;  %v1889_v57 = vrot.slane %v3865_v13, 2  ;;  %v2586_v2 = vshrl.u32 %v4743_v4, 16  ;;  %v2589_v41 = vshll.u32 %v4743_v4, 16  ;;  %v2861_v26 = vrot.slane %v4680_v28, 3 }
 0x21d   : > { %v3075_v5 = vadd.f32 %v4711_v18, %v3034_v32  ;;  %3709 = vmatmul.msk.bf16.gmra.mxu3 %vm473_vm2, %v2584_v37 }
 0x21e   : > { %v2339_v44 = vpop.f32.mrf.mxu2  ;;  %v2591_v37 = vrot.slane %v2589_v41, 3 }
 0x21f   : > { %v3111_v22 = vmax.f32 %v3075_v5, 0.0  ;;  %v2426_v38 = vadd.f32 %v2339_v44, %v2063_v25  ;;  %v1978_v0 = vpop.f32.mrf.mxu1  ;;  %v1890_v44 = vsel %vm1867_vm6, %v1887_v43, %v1889_v57 }
 0x220   : > { %v2064_v11 = vadd.f32 %v1978_v0, %v4329_v51  ;;  %v2862_v51 = vsel %vm2839_vm7, %v2859_v36, %v2861_v26 }
 0x221   : > { %3147 = vst [vmem:[%s4725_s12 + $0x8] sm:$0xff] %v3111_v22  ;;  %v2797_v16 = vadd.f32 %v4691_v48, %v2426_v38  ;;  %v2950_v63 = vpop.f32.mrf.mxu0  ;;  %v4755_v32 = vpop.f32.mrf.mxu3  ;;  %v2253_v22 = vsel %vm1867_vm6, %v2250_v29, %v2252_v56  ;;  %v2588_v38 = vrot.slane %v2586_v2, 2 }
 0x223   : > { %v3035_v14 = vadd.f32 %v2948_v47, %v2797_v16  ;;  %v2592_v43 = vor.u32 %v2591_v37, %v2588_v38  ;;  %v2863_v37 = vrot.slane %v4706_v45, 3 }
 0x225   : > { %v3076_v58 = vadd.f32 %v4711_v18, %v3035_v14  ;;  %v2593_v36 = vsel %vm2468_vm5, %v2583_v34, %v2592_v43 }
 0x226   : > { %v2341_v48 = vpop.f32.mrf.mxu2 }
 0x227   : > { %v3112_v47 = vmax.f32 %v3076_v58, 0.0  ;;  %v2427_v5 = vadd.f32 %v2341_v48, %v2064_v11  ;;  %v1981_v25 = vpop.f32.mrf.mxu1 }
 0x228   : > { %v2065_v0 = vadd.f32 %v1981_v25, %v4335_v8  ;;  %v2254_v8 = vrot.slane %v4706_v45, 2 }
 0x229   : > { %3148 = vst [vmem:[%s4725_s12 + $0x10] sm:$0xff] %v3112_v47  ;;  %v2798_v16 = vadd.f32 %v4702_v19, %v2427_v5  ;;  %v2953_v14 = vpop.f32.mrf.mxu0  ;;  %v4767_v19 = vpop.f32.mrf.mxu3  ;;  %v3866_v5 = vld [vmem:[%s3957_s27 + $0x68] sm:$0xff] }
 0x22a   : > { %3602 = vmatmul.msk.bf16.gmra.mxu1 %vm473_vm2, %v1890_v44  ;;  %v1891_v44 = vrot.slane %v3866_v5, 2 }
 0x22b   : > { %v3036_v28 = vadd.f32 %v2950_v63, %v2798_v16  ;;  %3689 = vmatmul.msk.bf16.gmra.mxu2 %vm473_vm2, %v2253_v22  ;;  %v4771_v63 = vld [vmem:[%s3957_s27 + $0x80] sm:$0xff] }
 0x22c   : > { %3727 = vmatmul.msk.bf16.gmra.mxu0 %vm473_vm2, %v2862_v51  ;;  %v2595_v25 = vshrl.u32 %v4771_v63, 16  ;;  %v2598_v22 = vshll.u32 %v4771_v63, 16 }
 0x22d   : > { %v3077_v29 = vadd.f32 %v4711_v18, %v3036_v28  ;;  %3710 = vmatmul.msk.bf16.gmra.mxu3 %vm473_vm2, %v2593_v36 }
 0x22e   : > { %v2344_v13 = vpop.f32.mrf.mxu2 }
 0x22f   : > { %v3113_v2 = vmax.f32 %v3077_v29, 0.0  ;;  %v2428_v41 = vadd.f32 %v2344_v13, %v2065_v0  ;;  %v1983_v58 = vpop.f32.mrf.mxu1  ;;  %v1892_v29 = vsel %vm1867_vm6, %v1889_v57, %v1891_v44  ;;  %v2255_v0 = vsel %vm1867_vm6, %v2252_v56, %v2254_v8 }
 0x230   : > { %v2066_v38 = vadd.f32 %v1983_v58, %v4346_v27  ;;  %v2597_v13 = vrot.slane %v2595_v25, 2  ;;  %v2864_v27 = vsel %vm2839_vm7, %v2861_v26, %v2863_v37 }
 0x231   : > { %3149 = vst [vmem:[%s4725_s12 + $0x18] sm:$0xff] %v3113_v2  ;;  %v2799_v11 = vadd.f32 %v4727_v7, %v2428_v41  ;;  %v2955_v48 = vpop.f32.mrf.mxu0  ;;  %v4783_v16 = vpop.f32.mrf.mxu3  ;;  %v2600_v2 = vrot.slane %v2598_v22, 3 }
 0x233   : > { %v3037_v47 = vadd.f32 %v2953_v14, %v2799_v11  ;;  %v2601_v57 = vor.u32 %v2600_v2, %v2597_v13 }
 0x235   : > { %v3078_v34 = vadd.f32 %v4711_v18, %v3037_v47  ;;  %v2602_v26 = vsel %vm2468_vm5, %v2592_v43, %v2601_v57 }
 0x236   : > { %v2346_v7 = vpop.f32.mrf.mxu2 }
 0x237   : > { %v3114_v14 = vmax.f32 %v3078_v34, 0.0  ;;  %v2429_v51 = vadd.f32 %v2346_v7, %v2066_v38  ;;  %v1986_v28 = vpop.f32.mrf.mxu1  ;;  %v3867_v7 = vld [vmem:[%s3957_s27 + $0x70] sm:$0xff] }
 0x238   : > { %v2067_v58 = vadd.f32 %v1986_v28, %v4352_v20  ;;  %v2256_v20 = vrot.slane %v4743_v4, 2 }
 0x239   : > { %3150 = vst [vmem:[%s4725_s12 + $0x20] sm:$0xff] %v3114_v14  ;;  %v2800_v41 = vadd.f32 %v4739_v55, %v2429_v51  ;;  %v2958_v36 = vpop.f32.mrf.mxu0  ;;  %v4795_v55 = vpop.f32.mrf.mxu3  ;;  %v1893_v14 = vrot.slane %v3867_v7, 2 }
 0x23a   : > { %3603 = vmatmul.msk.bf16.gmra.mxu1 %vm473_vm2, %v1892_v29 }
 0x23b   : > { %v3038_v45 = vadd.f32 %v2955_v48, %v2800_v41  ;;  %3690 = vmatmul.msk.bf16.gmra.mxu2 %vm473_vm2, %v2255_v0  ;;  %v4799_v48 = vld [vmem:[%s3957_s27 + $0x88] sm:$0xff]  ;;  %v2865_v0 = vrot.slane %v4743_v4, 3 }
 0x23c   : > { %3728 = vmatmul.msk.bf16.gmra.mxu0 %vm473_vm2, %v2864_v27  ;;  %v2604_v51 = vshrl.u32 %v4799_v48, 16  ;;  %v2607_v28 = vshll.u32 %v4799_v48, 16  ;;  %v1894_v27 = vsel %vm1867_vm6, %v1891_v44, %v1893_v14 }
 0x23d   : > { %v3079_v56 = vadd.f32 %v4711_v18, %v3038_v45  ;;  %3711 = vmatmul.msk.bf16.gmra.mxu3 %vm473_vm2, %v2602_v26  ;;  %v2257_v45 = vsel %vm1867_vm6, %v2254_v8, %v2256_v20 }
 0x23e   : > { %v2349_v11 = vpop.f32.mrf.mxu2 }
 0x23f   : > { %v3115_v47 = vmax.f32 %v3079_v56, 0.0  ;;  %v2430_v5 = vadd.f32 %v2349_v11, %v2067_v58  ;;  %v1988_v25 = vpop.f32.mrf.mxu1  ;;  %v2606_v56 = vrot.slane %v2604_v51, 2  ;;  %v2609_v58 = vrot.slane %v2607_v28, 3 }
 0x240   : > { %v2068_v29 = vadd.f32 %v1988_v25, %v4363_v21  ;;  %v2866_v21 = vsel %vm2839_vm7, %v2863_v37, %v2865_v0 }
 0x241   : > { %3151 = vst [vmem:[%s4725_s12 + $0x28] sm:$0xff] %v3115_v47  ;;  %v2801_v22 = vadd.f32 %v4755_v32, %v2430_v5  ;;  %v2960_v34 = vpop.f32.mrf.mxu0  ;;  %v4811_v13 = vpop.f32.mrf.mxu3  ;;  %v2610_v44 = vor.u32 %v2609_v58, %v2606_v56 }
 0x243   : > { %v3039_v38 = vadd.f32 %v2958_v36, %v2801_v22  ;;  %v2611_v37 = vsel %vm2468_vm5, %v2601_v57, %v2610_v44 }
 0x245   : > { %v3080_v43 = vadd.f32 %v4711_v18, %v3039_v38 }
 0x246   : > { %v2351_v32 = vpop.f32.mrf.mxu2 }
 0x247   : > { %v3116_v2 = vmax.f32 %v3080_v43, 0.0  ;;  %v2431_v41 = vadd.f32 %v2351_v32, %v2068_v29  ;;  %v1991_v36 = vpop.f32.mrf.mxu1  ;;  %v3868_v43 = vld [vmem:[%s3957_s27 + $0x78] sm:$0xff] }
 0x248   : > { %v2069_v5 = vadd.f32 %v1991_v36, %v4369_v10  ;;  %v1895_v29 = vrot.slane %v3868_v43, 2  ;;  %v2258_v10 = vrot.slane %v4771_v63, 2  ;;  %v2867_v36 = vrot.slane %v4771_v63, 3 }
 0x249   : > { %3152 = vst [vmem:[%s4725_s12 + $0x30] sm:$0xff] %v3116_v2  ;;  %v2802_v11 = vadd.f32 %v4767_v19, %v2431_v41  ;;  %v2963_v47 = vpop.f32.mrf.mxu0  ;;  %v4823_v19 = vpop.f32.mrf.mxu3 }
 0x24a   : > { %3604 = vmatmul.msk.bf16.gmra.mxu1 %vm473_vm2, %v1894_v27 }
 0x24b   : > { %v3040_v4 = vadd.f32 %v2960_v34, %v2802_v11  ;;  %3691 = vmatmul.msk.bf16.gmra.mxu2 %vm473_vm2, %v2257_v45  ;;  %v4827_v34 = vld [vmem:[%s3957_s27 + $0x90] sm:$0xff]  ;;  %v1896_v11 = vsel %vm1867_vm6, %v1893_v14, %v1895_v29 }
 0x24c   : > { %3729 = vmatmul.msk.bf16.gmra.mxu0 %vm473_vm2, %v2866_v21  ;;  %v2613_v32 = vshrl.u32 %v4827_v34, 16  ;;  %v2616_v2 = vshll.u32 %v4827_v34, 16 }
 0x24d   : > { %v3081_v8 = vadd.f32 %v4711_v18, %v3040_v4  ;;  %3712 = vmatmul.msk.bf16.gmra.mxu3 %vm473_vm2, %v2611_v37 }
 0x24e   : > { %v2354_v25 = vpop.f32.mrf.mxu2  ;;  %v2615_v21 = vrot.slane %v2613_v32, 2  ;;  %v2618_v4 = vrot.slane %v2616_v2, 3  ;;  %v3869_v32 = vld [vmem:[%s3957_s27 + $0x80] sm:$0xff] }
 0x24f   : > { %v3117_v26 = vmax.f32 %v3081_v8, 0.0  ;;  %v2432_v22 = vadd.f32 %v2354_v25, %v2069_v5  ;;  %v1993_v38 = vpop.f32.mrf.mxu1  ;;  %v1897_v2 = vrot.slane %v3869_v32, 2 }
 0x250   : > { %v2070_v41 = vadd.f32 %v1993_v38, %v4380_v46  ;;  %v2868_v46 = vsel %vm2839_vm7, %v2865_v0, %v2867_v36  ;;  %v2619_v14 = vor.u32 %v2618_v4, %v2615_v21 }
 0x251   : > { %3153 = vst [vmem:[%s4725_s12 + $0x38] sm:$0xff] %v3117_v26  ;;  %v2803_v7 = vadd.f32 %v4783_v16, %v2432_v22  ;;  %v2965_v51 = vpop.f32.mrf.mxu0  ;;  %v4839_v27 = vpop.f32.mrf.mxu3  ;;  %v1898_v21 = vsel %vm1867_vm6, %v1895_v29, %v1897_v2 }
 0x252   : > { %v2620_v0 = vsel %vm2468_vm5, %v2610_v44, %v2619_v14 }
 0x253   : > { %v3041_v28 = vadd.f32 %v2963_v47, %v2803_v7  ;;  %v2259_v47 = vsel %vm1867_vm6, %v2256_v20, %v2258_v10  ;;  %v4855_v7 = vld [vmem:[%s3957_s27 + $0x98] sm:$0xff] }
 0x255   : > { %v3082_v57 = vadd.f32 %v4711_v18, %v3041_v28 }
 0x256   : > { %v2356_v16 = vpop.f32.mrf.mxu2 }
 0x257   : > { %v3118_v45 = vmax.f32 %v3082_v57, 0.0  ;;  %v2433_v56 = vadd.f32 %v2356_v16, %v2070_v41  ;;  %v1996_v58 = vpop.f32.mrf.mxu1  ;;  %v2622_v57 = vshrl.u32 %v4855_v7, 16  ;;  %v2625_v41 = vshll.u32 %v4855_v7, 16 }
 0x258   : > { %v2071_v25 = vadd.f32 %v1996_v58, %v4386_v59  ;;  %v2260_v59 = vrot.slane %v4799_v48, 2 }
 0x259   : > { %3154 = vst [vmem:[%s4725_s12 + $0x40] sm:$0xff] %v3118_v45  ;;  %v2804_v8 = vadd.f32 %v4795_v55, %v2433_v56  ;;  %v2968_v5 = vpop.f32.mrf.mxu0  ;;  %v4851_v55 = vpop.f32.mrf.mxu3 }
 0x25a   : > { %3605 = vmatmul.msk.bf16.gmra.mxu1 %vm473_vm2, %v1896_v11  ;;  %v2261_v4 = vsel %vm1867_vm6, %v2258_v10, %v2260_v59 }
 0x25b   : > { %v3042_v63 = vadd.f32 %v2965_v51, %v2804_v8  ;;  %3692 = vmatmul.msk.bf16.gmra.mxu2 %vm473_vm2, %v2259_v47  ;;  %v2624_v8 = vrot.slane %v2622_v57, 2  ;;  %v3870_v57 = vld [vmem:[%s3957_s27 + $0x88] sm:$0xff] }
 0x25c   : > { %3730 = vmatmul.msk.bf16.gmra.mxu0 %vm473_vm2, %v2868_v46 }
 0x25d   : > { %v3083_v20 = vadd.f32 %v4711_v18, %v3042_v63  ;;  %3713 = vmatmul.msk.bf16.gmra.mxu3 %vm473_vm2, %v2620_v0 }
 0x25e   : > { %v2359_v26 = vpop.f32.mrf.mxu2 }
 0x25f   : > { %v3119_v22 = vmax.f32 %v3083_v20, 0.0  ;;  %v2434_v38 = vadd.f32 %v2359_v26, %v2071_v25  ;;  %v1998_v37 = vpop.f32.mrf.mxu1  ;;  %v2460_v20 = vld [vmem:[%s3957_s27 + $0xa0] sm:$0x3] }
 0x260   : > { %v2072_v16 = vadd.f32 %v1998_v37, %v4397_v31  ;;  %v2466_v10 = vunpack.c.l.b16 %v2460_v20 }
 0x261   : > { %3155 = vst [vmem:[%s4725_s12 + $0x48] sm:$0xff] %v3119_v22  ;;  %v2805_v51 = vadd.f32 %v4811_v13, %v2434_v38  ;;  %v2970_v28 = vpop.f32.mrf.mxu0  ;;  %v2869_v13 = vrot.slane %v4799_v48, 3  ;;  %v4867_v56 = vpop.f32.mrf.mxu3 }
 0x263   : > { %v3043_v43 = vadd.f32 %v2968_v5, %v2805_v51  ;;  %v2627_v5 = vrot.slane %v2625_v41, 3  ;;  %v2870_v31 = vsel %vm2839_vm7, %v2867_v36, %v2869_v13  ;;  %v4883_v51 = vpack.c.b16 %v2466_v10, %v2466_v10 }
 0x264   : > { %v1899_v41 = vrot.slane %v3870_v57, 2  ;;  %v2873_v57 = vrot.slane %v4855_v7, 3 }
 0x265   : > { %v3084_v44 = vadd.f32 %v4711_v18, %v3043_v43  ;;  %v2628_v29 = vor.u32 %v2627_v5, %v2624_v8 }
 0x266   : > { %v2361_v45 = vpop.f32.mrf.mxu2  ;;  %v1900_v8 = vsel %vm1867_vm6, %v1897_v2, %v1899_v41 }
 0x267   : > { %v3120_v58 = vmax.f32 %v3084_v44, 0.0  ;;  %v2435_v11 = vadd.f32 %v2361_v45, %v2072_v16  ;;  %v2001_v47 = vpop.f32.mrf.mxu1  ;;  %v2629_v0 = vsel %vm2468_vm5, %v2619_v14, %v2628_v29  ;;  %v2631_v44 = vshrl.u32 %v4883_v51, 16 }
 0x268   : > { %v2073_v26 = vadd.f32 %v2001_v47, %v4405_v1  ;;  %v2262_v1 = vrot.slane %v4827_v34, 2  ;;  %v2634_v16 = vshll.u32 %v4883_v51, 16 }
 0x269   : > { %3156 = vst [vmem:[%s4725_s12 + $0x50] sm:$0xff] %v3120_v58  ;;  %v2806_v46 = vadd.f32 %v4823_v19, %v2435_v11  ;;  %v2973_v63 = vpop.f32.mrf.mxu0  ;;  %v4880_v22 = vpop.f32.mrf.mxu3  ;;  %v2871_v58 = vrot.slane %v4827_v34, 3 }
 0x26a   : > { %3606 = vmatmul.msk.bf16.gmra.mxu1 %vm473_vm2, %v1898_v21  ;;  %v2263_v5 = vsel %vm1867_vm6, %v2260_v59, %v2262_v1 }
 0x26b   : > { %v3044_v48 = vadd.f32 %v2970_v28, %v2806_v46  ;;  %3693 = vmatmul.msk.bf16.gmra.mxu2 %vm473_vm2, %v2261_v4  ;;  %v2633_v46 = vrot.slane %v2631_v44, 2 }
 0x26c   : > { %3731 = vmatmul.msk.bf16.gmra.mxu0 %vm473_vm2, %v2870_v31 }
 0x26d   : > { %v3085_v25 = vadd.f32 %v4711_v18, %v3044_v48  ;;  %3714 = vmatmul.msk.bf16.gmra.mxu3 %vm473_vm2, %v2629_v0  ;;  %v3871_v0 = vld [vmem:[%s3957_s27 + $0x90] sm:$0xff] }
 0x26e   : > { %v2364_v19 = vpop.f32.mrf.mxu2 }
 0x26f   : > { %v3121_v36 = vmax.f32 %v3085_v25, 0.0  ;;  %v2436_v38 = vadd.f32 %v2364_v19, %v2073_v26  ;;  %v2003_v37 = vpop.f32.mrf.mxu1 }
 0x270   : > { %v2074_v45 = vadd.f32 %v2003_v37, %v4421_v15  ;;  %v2872_v15 = vsel %vm2839_vm7, %v2869_v13, %v2871_v58 }
 0x271   : > { %3157 = vst [vmem:[%s4725_s12 + $0x58] sm:$0xff] %v3121_v36  ;;  %v2807_v28 = vadd.f32 %v4839_v27, %v2436_v38  ;;  %v2975_v43 = vpop.f32.mrf.mxu0  ;;  %v2745_v11 = vpop.f32.mrf.mxu3 }
 0x273   : > { %v3045_v32 = vadd.f32 %v2973_v63, %v2807_v28  ;;  %v2636_v63 = vrot.slane %v2634_v16, 3  ;;  %v1901_v28 = vrot.slane %v3871_v0, 2 }
 0x275   : > { %v3086_v14 = vadd.f32 %v4711_v18, %v3045_v32  ;;  %v2637_v34 = vor.u32 %v2636_v63, %v2633_v46 }
 0x276   : > { %v2366_v27 = vpop.f32.mrf.mxu2 }
 0x277   : > { %v3122_v47 = vmax.f32 %v3086_v14, 0.0  ;;  %v2437_v21 = vadd.f32 %v2366_v27, %v2074_v45  ;;  %v2006_v4 = vpop.f32.mrf.mxu1  ;;  %v2638_v13 = vsel %vm2468_vm5, %v2628_v29, %v2637_v34  ;;  %v1902_v45 = vsel %vm1867_vm6, %v1899_v41, %v1901_v28 }
 0x278   : > { %v2075_v59 = vadd.f32 %v2006_v4, %v4440_v42  ;;  %v2264_v42 = vrot.slane %v4855_v7, 2  ;;  %v2874_v4 = vsel %vm2839_vm7, %v2871_v58, %v2873_v57  ;;  %v1903_v34 = vrot.slane %v4459_v33, 2 }
 0x279   : > { %3158 = vst [vmem:[%s4725_s12 + $0x60] sm:$0xff] %v3122_v47  ;;  %v2808_v31 = vadd.f32 %v4851_v55, %v2437_v21  ;;  %v2978_v20 = vpop.f32.mrf.mxu0  ;;  %v2747_v25 = vpop.f32.mrf.mxu3 }
 0x27a   : > { %3607 = vmatmul.msk.bf16.gmra.mxu1 %vm473_vm2, %v1900_v8  ;;  %v2265_v27 = vsel %vm1867_vm6, %v2262_v1, %v2264_v42  ;;  %v2133_v8 = vld [vmem:[%s3957_s27 + $0xa0] sm:$0x1] }
 0x27b   : > { %v3046_v48 = vadd.f32 %v2975_v43, %v2808_v31  ;;  %3694 = vmatmul.msk.bf16.gmra.mxu2 %vm473_vm2, %v2263_v5  ;;  %v2211_v7 = vunpack.c.l.b16 %v2133_v8 }
 0x27c   : > { %3732 = vmatmul.msk.bf16.gmra.mxu0 %vm473_vm2, %v2872_v15 }
 0x27d   : > { %v3087_v2 = vadd.f32 %v4711_v18, %v3046_v48  ;;  %3715 = vmatmul.msk.bf16.gmra.mxu3 %vm473_vm2, %v2638_v13 }
 0x27e   : > { %v2369_v10 = vpop.f32.mrf.mxu2 }
 0x27f   : > { %v3123_v55 = vmax.f32 %v3087_v2, 0.0  ;;  %v2438_v26 = vadd.f32 %v2369_v10, %v2075_v59  ;;  %v2008_v19 = vpop.f32.mrf.mxu1 }
 0x280   : > { %v2076_v32 = vadd.f32 %v2008_v19, %v4455_v17 }
 0x281   : > { %3159 = vst [vmem:[%s4725_s12 + $0x68] sm:$0xff] %v3123_v55  ;;  %v2809_v36 = vadd.f32 %v4867_v56, %v2438_v26  ;;  %v2980_v38 = vpop.f32.mrf.mxu0  ;;  %v2750_v44 = vpop.f32.mrf.mxu3 }
 0x283   : > { %v3047_v37 = vadd.f32 %v2978_v20, %v2809_v36  ;;  %v2230_v20 = vpack.c.b16 %v2211_v7, %v2211_v7 }
 0x285   : > { %v3088_v43 = vadd.f32 %v4711_v18, %v3047_v37  ;;  %v2266_v2 = vrot.slane %v2230_v20, 2 }
 0x286   : > { %v2371_v29 = vpop.f32.mrf.mxu2 }
 0x287   : > { %v3124_v16 = vmax.f32 %v3088_v43, 0.0  ;;  %v2439_v56 = vadd.f32 %v2371_v29, %v2076_v32  ;;  %v2011_v14 = vpop.f32.mrf.mxu1 }
 0x288   : > { %v2077_v1 = vadd.f32 %v2011_v14, %v4470_v54  ;;  %v2875_v54 = vrot.slane %v4883_v51, 3 }
 0x289   : > { %3160 = vst [vmem:[%s4725_s12 + $0x70] sm:$0xff] %v3124_v16  ;;  %v2810_v47 = vadd.f32 %v4880_v22, %v2439_v56  ;;  %v2983_v21 = vpop.f32.mrf.mxu0  ;;  %v2752_v46 = vpop.f32.mrf.mxu3 }
 0x28a   : > { %3608 = vmatmul.msk.bf16.gmra.mxu1 %vm473_vm2, %v1902_v45  ;;  %v2876_v0 = vsel %vm2839_vm7, %v2873_v57, %v2875_v54 }
 0x28b   : > { %v3048_v17 = vadd.f32 %v2980_v38, %v2810_v47  ;;  %3695 = vmatmul.msk.bf16.gmra.mxu2 %vm473_vm2, %v2265_v27  ;;  %v1904_v38 = vsel %vm1867_vm6, %v1901_v28, %v1903_v34 }
 0x28c   : > { %3733 = vmatmul.msk.bf16.gmra.mxu0 %vm473_vm2, %v2874_v4 }
 0x28d   : > { %v3089_v41 = vadd.f32 %v4711_v18, %v3048_v17 }
 0x28e   : > { %v2374_v5 = vpop.f32.mrf.mxu2 }
 0x28f   : > { %v3125_v22 = vmax.f32 %v3089_v41, 0.0  ;;  %v2440_v63 = vadd.f32 %v2374_v5, %v2077_v1  ;;  %v2013_v31 = vpop.f32.mrf.mxu1 }
 0x290   : > { %v2078_v10 = vadd.f32 %v2013_v31, %v4485_v62 }
 0x291   : > { %3161 = vst [vmem:[%s4725_s12 + $0x78] sm:$0xff] %v3125_v22  ;;  %v2811_v58 = vadd.f32 %v2745_v11, %v2440_v63  ;;  %v2985_v15 = vpop.f32.mrf.mxu0  ;;  %v2755_v26 = vpop.f32.mrf.mxu3  ;;  %v2267_v11 = vsel %vm1867_vm6, %v2264_v42, %v2266_v2 }
 0x293   : > { %v3049_v48 = vadd.f32 %v2983_v21, %v2811_v58 }
 0x295   : > { %v3090_v59 = vadd.f32 %v4711_v18, %v3049_v48 }
 0x296   : > { %v2376_v55 = vpop.f32.mrf.mxu2 }
 0x297   : > { %v3126_v19 = vmax.f32 %v3090_v59, 0.0  ;;  %v2441_v13 = vadd.f32 %v2376_v55, %v2078_v10  ;;  %v2016_v36 = vpop.f32.mrf.mxu1 }
 0x298   : > { %v2079_v51 = vadd.f32 %v2016_v36, %v4502_v6 }
 0x299   : > { %3162 = vst [vmem:[%s4725_s12 + $0x80] sm:$0xff] %v3126_v19  ;;  %v2812_v37 = vadd.f32 %v2747_v25, %v2441_v13  ;;  %v2988_v33 = vpop.f32.mrf.mxu0  ;;  %v2757_v42 = vpop.f32.mrf.mxu3 }
 0x29a   : > { %3609 = vmatmul.msk.bf16.gmra.mxu1 %vm473_vm2, %v1904_v38 }
 0x29b   : > { %v3050_v43 = vadd.f32 %v2985_v15, %v2812_v37  ;;  %3696 = vmatmul.msk.bf16.gmra.mxu2 %vm473_vm2, %v2267_v11 }
 0x29c   : > { %3734 = vmatmul.msk.bf16.gmra.mxu0 %vm473_vm2, %v2876_v0 }
 0x29d   : > { %v3091_v62 = vadd.f32 %v4711_v18, %v3050_v43 }
 0x29e   : > { %v2379_v28 = vpop.f32.mrf.mxu2 }
 0x29f   : > { %v3127_v32 = vmax.f32 %v3091_v62, 0.0  ;;  %v2442_v29 = vadd.f32 %v2379_v28, %v2079_v51  ;;  %v2018_v25 = vpop.f32.mrf.mxu1 }
 0x2a0   : > { %v2080_v45 = vadd.f32 %v2018_v25, %v4516_v39 }
 0x2a1   : > { %3163 = vst [vmem:[%s4725_s12 + $0x88] sm:$0xff] %v3127_v32  ;;  %v2813_v16 = vadd.f32 %v2750_v44, %v2442_v29  ;;  %v2990_v57 = vpop.f32.mrf.mxu0  ;;  %v2760_v47 = vpop.f32.mrf.mxu3 }
 0x2a3   : > { %v3051_v56 = vadd.f32 %v2988_v33, %v2813_v16 }
 0x2a5   : > { %v3092_v14 = vadd.f32 %v4711_v18, %v3051_v56 }
 0x2a6   : > { %v2381_v27 = vpop.f32.mrf.mxu2 }
 0x2a7   : > { %v3128_v21 = vmax.f32 %v3092_v14, 0.0  ;;  %v2443_v4 = vadd.f32 %v2381_v27, %v2080_v45  ;;  %v2021_v6 = vpop.f32.mrf.mxu1 }
 0x2a8   : > { %v2081_v44 = vadd.f32 %v2021_v6, %v4526_v40 }
 0x2a9   : > { %3164 = vst [vmem:[%s4725_s12 + $0x90] sm:$0xff] %v3128_v21  ;;  %v2814_v8 = vadd.f32 %v2752_v46, %v2443_v4  ;;  %v2993_v17 = vpop.f32.mrf.mxu0  ;;  %v2762_v39 = vpop.f32.mrf.mxu3 }
 0x2ab   : > { %v3052_v7 = vadd.f32 %v2990_v57, %v2814_v8 }
 0x2ad   : > { %v3093_v41 = vadd.f32 %v4711_v18, %v3052_v7 }
 0x2ae   : > { %v2384_v1 = vpop.f32.mrf.mxu2 }
 0x2af   : > { %v3129_v5 = vmax.f32 %v3093_v41, 0.0  ;;  %v2444_v22 = vadd.f32 %v2384_v1, %v2081_v44  ;;  %v2023_v63 = vpop.f32.mrf.mxu1 }
 0x2b0   : > { %v2082_v46 = vadd.f32 %v2023_v63, %v4540_v60 }
 0x2b1   : > { %3165 = vst [vmem:[%s4725_s12 + $0x98] sm:$0xff] %v3129_v5  ;;  %v2815_v31 = vadd.f32 %v2755_v26, %v2444_v22  ;;  %v2995_v20 = vpop.f32.mrf.mxu0  ;;  %v2765_v54 = vpop.f32.mrf.mxu3 }
 0x2b3   : > { %v3053_v58 = vadd.f32 %v2993_v17, %v2815_v31 }
 0x2b5   : > { %v3094_v15 = vadd.f32 %v4711_v18, %v3053_v58 }
 0x2b6   : > { %v2386_v48 = vpop.f32.mrf.mxu2 }
 0x2b7   : > { %v3130_v34 = vmax.f32 %v3094_v15, 0.0  ;;  %v2445_v2 = vadd.f32 %v2386_v48, %v2082_v46  ;;  %v2026_v59 = vpop.f32.mrf.mxu1 }
 0x2b8   : > { %v2083_v26 = vadd.f32 %v2026_v59, %v4549_v53 }
 0x2b9   : > { %3166 = vst [vmem:[%s4725_s12 + $0xa0] sm:$0xff] %v3130_v34  ;;  %v2816_v40 = vadd.f32 %v2757_v42, %v2445_v2  ;;  %v2998_v10 = vpop.f32.mrf.mxu0  ;;  %v2767_v0 = vpop.f32.mrf.mxu3 }
 0x2bb   : > { %v3054_v55 = vadd.f32 %v2995_v20, %v2816_v40 }
 0x2bd   : > { %v3095_v19 = vadd.f32 %v4711_v18, %v3054_v55 }
 0x2be   : > { %v2389_v13 = vpop.f32.mrf.mxu2 }
 0x2bf   : > { %v3131_v36 = vmax.f32 %v3095_v19, 0.0  ;;  %v2446_v38 = vadd.f32 %v2389_v13, %v2083_v26  ;;  %v2028_v11 = vpop.f32.mrf.mxu1 }
 0x2c0   : > { %v2084_v62 = vadd.f32 %v2028_v11, %v4562_v23 }
 0x2c1   : > { %3167 = vst [vmem:[%s4725_s12 + $0xa8] sm:$0xff] %v3131_v36  ;;  %v2817_v60 = vadd.f32 %v2760_v47, %v2446_v38  ;;  %v3000_v37 = vpop.f32.mrf.mxu0  ;;  %v2770_v14 = vpop.f32.mrf.mxu3 }
 0x2c3   : > { %v3055_v33 = vadd.f32 %v2998_v10, %v2817_v60 }
 0x2c5   : > { %v3096_v43 = vadd.f32 %v4711_v18, %v3055_v33 }
 0x2c6   : > { %v2391_v51 = vpop.f32.mrf.mxu2 }
 0x2c7   : > { %v3132_v28 = vmax.f32 %v3096_v43, 0.0  ;;  %v2447_v42 = vadd.f32 %v2391_v51, %v2084_v62  ;;  %v2031_v32 = vpop.f32.mrf.mxu1 }
 0x2c8   : > { %v2085_v57 = vadd.f32 %v2031_v32, %v4571_v12 }
 0x2c9   : > { %3168 = vst [vmem:[%s4725_s12 + $0xb0] sm:$0xff] %v3132_v28  ;;  %v2818_v53 = vadd.f32 %v2762_v39, %v2447_v42  ;;  %v3003_v29 = vpop.f32.mrf.mxu0  ;;  %v2772_v12 = vpop.f32.mrf.mxu3 }
 0x2cb   : > { %v3056_v25 = vadd.f32 %v3000_v37, %v2818_v53 }
 0x2cd   : > { %v3097_v16 = vadd.f32 %v4711_v18, %v3056_v25 }
 0x2ce   : > { %v2394_v56 = vpop.f32.mrf.mxu2 }
 0x2cf   : > { %v3133_v45 = vmax.f32 %v3097_v16, 0.0  ;;  %v2448_v27 = vadd.f32 %v2394_v56, %v2085_v57  ;;  %v2033_v47 = vpop.f32.mrf.mxu1 }
 0x2d0   : > { %v2086_v8 = vadd.f32 %v2033_v47, %v4584_v52 }
 0x2d1   : > { %3169 = vst [vmem:[%s4725_s12 + $0xb8] sm:$0xff] %v3133_v45  ;;  %v2819_v23 = vadd.f32 %v2765_v54, %v2448_v27  ;;  %v3005_v21 = vpop.f32.mrf.mxu0  ;;  %v2775_v48 = vpop.f32.mrf.mxu3 }
 0x2d3   : > { %v3057_v4 = vadd.f32 %v3003_v29, %v2819_v23 }
 0x2d5   : > { %v3098_v6 = vadd.f32 %v4711_v18, %v3057_v4 }
 0x2d6   : > { %v2396_v17 = vpop.f32.mrf.mxu2 }
 0x2d7   : > { %v3134_v7 = vmax.f32 %v3098_v6, 0.0  ;;  %v2449_v41 = vadd.f32 %v2396_v17, %v2086_v8  ;;  %v2036_v44 = vpop.f32.mrf.mxu1 }
 0x2d8   : > { %v2087_v39 = vadd.f32 %v2036_v44, %v4593_v24 }
 0x2d9   : > { %3170 = vst [vmem:[%s4725_s12 + $0xc0] sm:$0xff] %v3134_v7  ;;  %v2820_v1 = vadd.f32 %v2767_v0, %v2449_v41  ;;  %v3008_v5 = vpop.f32.mrf.mxu0  ;;  %v2777_v13 = vpop.f32.mrf.mxu3 }
 0x2db   : > { %v3058_v22 = vadd.f32 %v3005_v21, %v2820_v1 }
 0x2dd   : > { %v3099_v63 = vadd.f32 %v4711_v18, %v3058_v22 }
 0x2de   : > { %v2399_v31 = vpop.f32.mrf.mxu2 }
 0x2df   : > { %v3135_v20 = vmax.f32 %v3099_v63, 0.0  ;;  %v2450_v58 = vadd.f32 %v2399_v31, %v2087_v39  ;;  %v2038_v15 = vpop.f32.mrf.mxu1 }
 0x2e0   : > { %v2088_v59 = vadd.f32 %v2038_v15, %v4606_v30 }
 0x2e1   : > { %3171 = vst [vmem:[%s4725_s12 + $0xc8] sm:$0xff] %v3135_v20  ;;  %v2821_v52 = vadd.f32 %v2770_v14, %v2450_v58  ;;  %v3010_v46 = vpop.f32.mrf.mxu0  ;;  %v2780_v42 = vpop.f32.mrf.mxu3 }
 0x2e3   : > { %v3059_v34 = vadd.f32 %v3008_v5, %v2821_v52 }
 0x2e5   : > { %v3100_v2 = vadd.f32 %v4711_v18, %v3059_v34 }
 0x2e6   : > { %v2401_v40 = vpop.f32.mrf.mxu2 }
 0x2e7   : > { %v3136_v10 = vmax.f32 %v3100_v2, 0.0  ;;  %v2451_v54 = vadd.f32 %v2401_v40, %v2088_v59  ;;  %v2041_v55 = vpop.f32.mrf.mxu1 }
 0x2e8   : > { %v2089_v38 = vadd.f32 %v2041_v55, %v4615_v3 }
 0x2e9   : > { %3172 = vst [vmem:[%s4725_s12 + $0xd0] sm:$0xff] %v3136_v10  ;;  %v2822_v24 = vadd.f32 %v2772_v12, %v2451_v54  ;;  %v3013_v19 = vpop.f32.mrf.mxu0 }
 0x2eb   : > { %v3060_v26 = vadd.f32 %v3010_v46, %v2822_v24 }
 0x2ed   : > { %v3101_v36 = vadd.f32 %v4711_v18, %v3060_v26 }
 0x2ee   : > { %v2404_v11 = vpop.f32.mrf.mxu2 }
 0x2ef   : > { %v3137_v60 = vmax.f32 %v3101_v36, 0.0  ;;  %v2452_v37 = vadd.f32 %v2404_v11, %v2089_v38  ;;  %v2043_v33 = vpop.f32.mrf.mxu1 }
 0x2f0   : > { %v2090_v51 = vadd.f32 %v2043_v33, %v4628_v9  ;;  %v2782_v9 = vpop.f32.mrf.mxu3 }
 0x2f1   : > { %3173 = vst [vmem:[%s4725_s12 + $0xd8] sm:$0xff] %v3137_v60  ;;  %v2823_v30 = vadd.f32 %v2775_v48, %v2452_v37  ;;  %v3015_v0 = vpop.f32.mrf.mxu0  ;;  %v5025_v48 = vld [vmem:[#allocation2_spill] sm:$0xff] }
 0x2f3   : > { %v3061_v43 = vadd.f32 %v3013_v19, %v2823_v30  ;;  %v5026_v19 = vld [vmem:[#allocation3_spill] sm:$0xff] }
 0x2f5   : > { %v3102_v62 = vadd.f32 %v4711_v18, %v3061_v43 }
 0x2f6   : > { %v2406_v28 = vpop.f32.mrf.mxu2 }
 0x2f7   : > { %v3138_v32 = vmax.f32 %v3102_v62, 0.0  ;;  %v2453_v53 = vadd.f32 %v2406_v28, %v2090_v51  ;;  %v2046_v29 = vpop.f32.mrf.mxu1 }
 0x2f8   : > { %v2091_v56 = vadd.f32 %v2046_v29, %v4637_v49  ;;  %v2785_v12 = vpop.f32.mrf.mxu3 }
 0x2f9   : > { %3174 = vst [vmem:[%s4725_s12 + $0xe0] sm:$0xff] %v3138_v32  ;;  %v2824_v3 = vadd.f32 %v2777_v13, %v2453_v53  ;;  %v3018_v25 = vpop.f32.mrf.mxu0 }
 0x2fb   : > { %v3062_v16 = vadd.f32 %v3015_v0, %v2824_v3  ;;  %v3872_v0 = vld [vmem:[%s5005_s2] ss:$0 sm:$0xff] }
 0x2fd   : > { %v3103_v57 = vadd.f32 %v4711_v18, %v3062_v16 }
 0x2fe   : > { %v2409_v14 = vpop.f32.mrf.mxu2 }
 0x2ff   : > { %v3139_v45 = vmax.f32 %v3103_v57, 0.0  ;;  %v2454_v27 = vadd.f32 %v2409_v14, %v2091_v56  ;;  %v2048_v47 = vpop.f32.mrf.mxu1 }
 0x300   : > { %v2092_v8 = vadd.f32 %v2048_v47, %v4650_v50  ;;  %v2787_v52 = vpop.f32.mrf.mxu3 }
 0x301   : > { %3175 = vst [vmem:[%s4725_s12 + $0xe8] sm:$0xff] %v3139_v45  ;;  %v2825_v23 = vadd.f32 %v2780_v42, %v2454_v27  ;;  %v3020_v21 = vpop.f32.mrf.mxu0 }
 0x303   : > { %v3063_v4 = vadd.f32 %v3018_v25, %v2825_v23 }
 0x305   : > { %v3104_v6 = vadd.f32 %v4711_v18, %v3063_v4 }
 0x306   : > { %v2411_v17 = vpop.f32.mrf.mxu2 }
 0x307   : > { %v3140_v7 = vmax.f32 %v3104_v6, 0.0  ;;  %v2455_v41 = vadd.f32 %v2411_v17, %v2092_v8  ;;  %v2051_v44 = vpop.f32.mrf.mxu1 }
 0x308   : > { %v2093_v63 = vadd.f32 %v2051_v44, %v4659_v35  ;;  %v2790_v13 = vpop.f32.mrf.mxu3 }
 0x309   : > { %3176 = vst [vmem:[%s4725_s12 + $0xf0] sm:$0xff] %v3140_v7  ;;  %v2826_v49 = vadd.f32 %v2782_v9, %v2455_v41  ;;  %v3023_v5 = vpop.f32.mrf.mxu0 }
 0x30b   : > { %v3064_v1 = vadd.f32 %v3020_v21, %v2826_v49 }
 0x30d   : > { %v3105_v22 = vadd.f32 %v4711_v18, %v3064_v1 }
 0x30e   : > { %v2414_v39 = vpop.f32.mrf.mxu2 }
 0x30f   : > { %v3141_v31 = vmax.f32 %v3105_v22, 0.0  ;;  %v2456_v20 = vadd.f32 %v2414_v39, %v2093_v63  ;;  %v2053_v58 = vpop.f32.mrf.mxu1 }
 0x310   : > { %v2094_v34 = vadd.f32 %v2053_v58, %v5025_v48  ;;  %v2792_v42 = vpop.f32.mrf.mxu3 }
 0x311   : > { %3177 = vst [vmem:[%s4725_s12 + $0xf8] sm:$0xff] %v3141_v31  ;;  %v2827_v50 = vadd.f32 %v2785_v12, %v2456_v20  ;;  %v3025_v2 = vpop.f32.mrf.mxu0 }
 0x313   : > { %v3065_v15 = vadd.f32 %v3023_v5, %v2827_v50 }
 0x315   : > { %v3106_v46 = vadd.f32 %v4711_v18, %v3065_v15 }
 0x316   : > { %v2416_v59 = vpop.f32.mrf.mxu2 }
 0x317   : > { %v3142_v40 = vmax.f32 %v3106_v46, 0.0  ;;  %v2457_v10 = vadd.f32 %v2416_v59, %v2094_v34  ;;  %v2056_v54 = vpop.f32.mrf.mxu1 }
 0x318   : > { %v2095_v26 = vadd.f32 %v2056_v54, %v5026_v19 }
 0x319   : > { %3178 = vst [vmem:[%s4725_s12 + $0x100] sm:$0xff] %v3142_v40  ;;  %v2828_v35 = vadd.f32 %v2787_v52, %v2457_v10  ;;  %v3028_v60 = vpop.f32.mrf.mxu0 }
 0x31b   : > { %v3066_v55 = vadd.f32 %v3025_v2, %v2828_v35 }
 0x31d   : > { %v3107_v24 = vadd.f32 %v4711_v18, %v3066_v55 }
 0x31e   : > { %v2419_v36 = vpop.f32.mrf.mxu2 }
 0x31f   : > { %v3143_v38 = vmax.f32 %v3107_v24, 0.0  ;;  %v2458_v11 = vadd.f32 %v2419_v36, %v2095_v26  ;;  %v2058_v33 = vpop.f32.mrf.mxu1 }
 0x320   : > { %v2096_v18 = vadd.f32 %v2058_v33, %v4698_v61 }
 0x321   : > { %3179 = vst [vmem:[%s4725_s12 + $0x108] sm:$0xff] %v3143_v38  ;;  %v2829_v37 = vadd.f32 %v2790_v13, %v2458_v11  ;;  %v3030_v53 = vpop.f32.mrf.mxu0 }
 0x323   : > { %v3067_v30 = vadd.f32 %v3028_v60, %v2829_v37 }
 0x325   : > { %v3108_v43 = vadd.f32 %v3872_v0, %v3067_v30 }
 0x326   : > { %v2421_v62 = vpop.f32.mrf.mxu2 }
 0x327   : > { %v3144_v51 = vmax.f32 %v3108_v43, 0.0  ;;  %v2459_v28 = vadd.f32 %v2421_v62, %v2096_v18 }
 0x329   : > { %3180 = vst [vmem:[%s4725_s12 + $0x110] sm:$0xff] %v3144_v51  ;;  %v2830_v32 = vadd.f32 %v2792_v42, %v2459_v28 }
 0x32b   : > { %v3068_v29 = vadd.f32 %v3030_v53, %v2830_v32 }
 0x32d   : > { %v3109_v3 = vadd.f32 %v3872_v0, %v3068_v29 }
 0x32f   : > { %v3145_v25 = vmax.f32 %v3109_v3, 0.0 }
 0x331   : > { %3181 = vst [vmem:[%s4725_s12 + $0x118] sm:$0x3f] %v3145_v25 }
 0x332 PF: > { %s13_s14 = sadd.s32 1, %s3895_s14   ;;  %s5027_s12 = smov %s3891_s13 }
 0x333   : > { %p10_p5 = scmp.ge.s32.totalorder %s13_s14, 4   ;;  %s5028_s13 = smov %s5030_s15 }
 0x335   :  { %12 = sbr.rel (!%p10_p5) target bundleno = 2 (0x2), region = 72 }

</bundles_post_ra>
